<compile_context>
chip_gen: v6e
topology: v6e:2x2x1
jax: 0.10.0
libtpu: 0.0.40
codegen_flags: <defaults>
</compile_context>

<pallas_src>
import jax
import jax.numpy as jnp
from jax import lax
from jax.experimental import pallas as pl
from jax.experimental.pallas import tpu as pltpu

KSIZE = 7
PAD = 3
NTAPS = KSIZE * KSIZE


def _make_sam_kernel(W, nb, rows):
    def kernel(x_ref, wm_ref, o_ref, maps_ref):
        # x_ref   : (nb, C, H*W) VMEM, native dtype
        # wm_ref  : (49, rows, H*W) VMEM f32 -- per-tap weighted same-padding masks
        # o_ref   : (nb, C, H*W) VMEM
        # maps_ref: (rows, H*W) VMEM f32 scratch (rows = 8-padded 2*nb)
        x = x_ref[...]
        C = x.shape[1]
        HW = x.shape[2]

        # Channel reductions: max in the native dtype, mean via f32-accumulated
        # sum -- no full (nb, C, HW) f32 copy of x.
        mx = jnp.max(x, axis=1).astype(jnp.float32)                 # (nb, HW)
        av = jnp.sum(x, axis=1, dtype=jnp.float32) * (1.0 / C)      # (nb, HW)

        # Stack [max rows ; mean rows ; zero pad] into the 8-row-padded scratch.
        maps_ref[...] = jnp.zeros((rows, HW), jnp.float32)
        maps_ref[pl.ds(0, nb), :] = mx
        maps_ref[pl.ds(nb, nb), :] = av
        maps = maps_ref[...]                                        # (rows, HW) f32

        # 7x7 "same" conv over the 2-channel (max, mean) map as 49 shifted
        # multiply-adds.  Boundary masks and the per-row tap weight are already
        # folded into wm_ref, so each tap is one XLU roll + one mul + one add.
        acc = jnp.zeros((rows, HW), jnp.float32)
        for ki in range(KSIZE):
            for kj in range(KSIZE):
                shift = (ki - PAD) * W + (kj - PAD)                 # flattened tap offset
                rolled = maps if shift == 0 else pltpu.roll(
                    maps, shift=(-shift) % HW, axis=1)
                acc = acc + wm_ref[ki * KSIZE + kj] * rolled

        conv = acc[0:nb] + acc[nb:2 * nb]                           # max path + mean path
        gate = jax.nn.sigmoid(conv)                                 # (nb, HW) f32
        # Multiply in f32 (implicit promotion); cast only the final product.
        o_ref[...] = (x * gate[:, None, :]).astype(o_ref.dtype)

    return kernel


def _build_weighted_masks(conv_w, nb, rows, H, W):
    """wm[t, r, p] = same_padding_valid[t, p] * tap_weight[r, t].

    Rows [0, nb) carry the max-channel tap weight, rows [nb, 2*nb) the
    mean-channel tap weight, rows [2*nb, rows) are zero padding.
    """
    HW = H * W
    pos = jnp.arange(HW, dtype=jnp.int32)
    prow = pos // W
    pcol = pos % W
    valids = []
    for ki in range(KSIZE):
        for kj in range(KSIZE):
            ry = prow + (ki - PAD)
            cx = pcol + (kj - PAD)
            valids.append((ry >= 0) & (ry < H) & (cx >= 0) & (cx < W))
    valid = jnp.stack(valids, axis=0).astype(jnp.float32)           # (49, HW)

    w = conv_w.reshape(2, NTAPS).astype(jnp.float32)                # [max taps ; mean taps]
    row_w = jnp.zeros((rows, NTAPS), jnp.float32)
    row_w = row_w.at[0:nb, :].set(w[0])                             # max-map rows
    row_w = row_w.at[nb:2 * nb, :].set(w[1])                        # mean-map rows
    return row_w.T[:, :, None] * valid[:, None, :]                  # (49, rows, HW) f32


def sam_forward(x, conv_w):
    """x: (N, C, H, W) -- N independent images (fold B*T into N at production
    scale to amortize launch overhead).  conv_w: (1, 2, 7, 7) PyTorch OIHW
    Conv2d(2->1, k=7, bias=False) weight."""
    N, C, H, W = x.shape
    HW = H * W

    # Images per grid block: nb >= 4 keeps the 2*nb map rows sublane-full (8),
    # and the "parallel" leading grid axis lets v7x shard blocks over its 2 TCs
    # (no-op on v5e/v6e, single block at the tiny test shapes).
    nb = 4 if (N % 4 == 0) else N
    rows = max(8, pl.cdiv(2 * nb, 8) * 8)
    grid = (N // nb,)

    x_flat = x.reshape(N, C, HW)                        # lane-dense spatial layout (free)
    wm = _build_weighted_masks(conv_w, nb, rows, H, W)  # shared by every grid block

    out_flat = pl.pallas_call(
        _make_sam_kernel(W, nb, rows),
        out_shape=jax.ShapeDtypeStruct((N, C, HW), x.dtype),
        grid=grid,
        in_specs=[
            pl.BlockSpec((nb, C, HW), lambda i: (i, 0, 0)),
            pl.BlockSpec((NTAPS, rows, HW), lambda i: (0, 0, 0)),
        ],
        out_specs=pl.BlockSpec((nb, C, HW), lambda i: (i, 0, 0)),
        scratch_shapes=[pltpu.VMEM((rows, HW), jnp.float32)],
        compiler_params=pltpu.CompilerParams(
            dimension_semantics=("parallel",),
            # Explicit limit (mandatory on v5e's 16 MiB scoped default).
            # Re-derive for production C/H/W; on v7x (64 MiB VMEM) prefer
            # Buffered(1) or C-tiled two-pass reduce-then-apply over raising it.
            vmem_limit_bytes=32 * 1024 * 1024,
        ),
    )(x_flat, wm)
    return out_flat.reshape(N, C, H, W)


def sam_reference(x, conv_w):
    mx = jnp.max(x, axis=1, keepdims=True)
    av = jnp.mean(x, axis=1, keepdims=True)
    cat = jnp.concatenate([mx, av], axis=1)
    conv = lax.conv_general_dilated(
        cat, conv_w, window_strides=(1, 1), padding=[(PAD, PAD), (PAD, PAD)],
        dimension_numbers=("NCHW", "OIHW", "NCHW"),
        precision=lax.Precision.HIGHEST)
    return jax.nn.sigmoid(conv) * x


if __name__ == "__main__":
    key = jax.random.PRNGKey(0)
    kx, kw = jax.random.split(key)

    # Small shapes consistent with the module: B=2, C=4, H=W=16.
    x = jax.random.normal(kx, (2, 4, 16, 16), dtype=jnp.float32)
    # Conv2d(in=2, out=1, k=7, bias=False) weight, deterministic init.
    conv_w = jax.random.normal(kw, (1, 2, KSIZE, KSIZE), dtype=jnp.float32) * 0.1

    out = sam_forward(x, conv_w)
    out = jax.block_until_ready(out)

    ref = sam_reference(x, conv_w)
    assert out.shape == ref.shape and out.dtype == ref.dtype
    err = float(jnp.max(jnp.abs(out - ref)))
    assert jnp.allclose(out, ref, atol=1e-4, rtol=1e-4), err

    print("KERNEL_OK")
</pallas_src>

<mosaic_0001>
module attributes {stable_mosaic.version = 11 : i64} {
  func.func @kernel(%arg0: i32, %arg1: memref<2x4x256xf32, #tpu.memory_space<vmem>>, %arg2: memref<49x8x256xf32, #tpu.memory_space<vmem>>, %arg3: memref<2x4x256xf32, #tpu.memory_space<vmem>>, %arg4: memref<8x256xf32, #tpu.memory_space<vmem>>) attributes {dimension_semantics = [#tpu.dimension_semantics<parallel>], iteration_bounds = array<i64: 1>, scalar_prefetch = 0 : i64, scratch_operands = 1 : i64, tpu.core_type = #tpu.core_type<tc>, window_params = [{transform_indices = @transform_0, window_bounds = array<i64: 2, 4, 256>}, {pipeline_mode = #tpu.pipeline_mode<synchronous>, transform_indices = @transform_1, window_bounds = array<i64: 49, 8, 256>}, {transform_indices = @transform_2, window_bounds = array<i64: 2, 4, 256>}]} {
    %c0 = arith.constant 0 : index
    %c0_0 = arith.constant 0 : index
    %c0_1 = arith.constant 0 : index
    %0 = vector.load %arg1[%c0, %c0_0, %c0_1] : memref<2x4x256xf32, #tpu.memory_space<vmem>>, vector<2x4x256xf32>
    %cst = arith.constant dense<0xFF800000> : vector<2x256xf32>
    %1 = vector.multi_reduction <maximumf>, %0, %cst [1] : vector<2x4x256xf32> to vector<2x256xf32>
    %cst_2 = arith.constant dense<0.000000e+00> : vector<2x256xf32>
    %2 = vector.multi_reduction <add>, %0, %cst_2 [1] : vector<2x4x256xf32> to vector<2x256xf32>
    %cst_3 = arith.constant 2.500000e-01 : f32
    %3 = vector.broadcast %cst_3 : f32 to vector<2x256xf32>
    %4 = arith.mulf %2, %3 : vector<2x256xf32>
    %cst_4 = arith.constant 0.000000e+00 : f32
    %5 = vector.broadcast %cst_4 : f32 to vector<8x256xf32>
    %c0_5 = arith.constant 0 : index
    %c0_6 = arith.constant 0 : index
    %6 = vector.load %arg4[%c0_5, %c0_6] : memref<8x256xf32, #tpu.memory_space<vmem>>, vector<8x256xf32>
    tpu.vector_store %arg4[%c0_5, %c0_6], %5 {strides = array<i32>} : memref<8x256xf32, #tpu.memory_space<vmem>>, vector<8x256xf32>,
    %c0_7 = arith.constant 0 : index
    %c0_8 = arith.constant 0 : index
    %7 = vector.load %arg4[%c0_7, %c0_8] : memref<8x256xf32, #tpu.memory_space<vmem>>, vector<2x256xf32>
    tpu.vector_store %arg4[%c0_7, %c0_8], %1 {strides = array<i32>} : memref<8x256xf32, #tpu.memory_space<vmem>>, vector<2x256xf32>,
    %c2 = arith.constant 2 : index
    %c0_9 = arith.constant 0 : index
    %8 = vector.load %arg4[%c2, %c0_9] : memref<8x256xf32, #tpu.memory_space<vmem>>, vector<2x256xf32>
    tpu.vector_store %arg4[%c2, %c0_9], %4 {strides = array<i32>} : memref<8x256xf32, #tpu.memory_space<vmem>>, vector<2x256xf32>,
    %c0_10 = arith.constant 0 : index
    %c0_11 = arith.constant 0 : index
    %9 = vector.load %arg4[%c0_10, %c0_11] : memref<8x256xf32, #tpu.memory_space<vmem>>, vector<8x256xf32>
    %cst_12 = arith.constant 0.000000e+00 : f32
    %10 = vector.broadcast %cst_12 : f32 to vector<8x256xf32>
    %c51_i32 = arith.constant 51 : i32
    %11 = tpu.dynamic_rotate %9 by %c51_i32 dim 1 : vector<8x256xf32>, i32 -> vector<8x256xf32>
    %c0_13 = arith.constant 0 : index
    %c0_14 = arith.constant 0 : index
    %c0_15 = arith.constant 0 : index
    %12 = vector.load %arg2[%c0_13, %c0_14, %c0_15] : memref<49x8x256xf32, #tpu.memory_space<vmem>>, vector<1x8x256xf32>
    %13 = vector.shape_cast %12 : vector<1x8x256xf32> to vector<8x256xf32>
    %14 = arith.mulf %13, %11 : vector<8x256xf32>
    %15 = arith.addf %10, %14 : vector<8x256xf32>
    %c50_i32 = arith.constant 50 : i32
    %16 = tpu.dynamic_rotate %9 by %c50_i32 dim 1 : vector<8x256xf32>, i32 -> vector<8x256xf32>
    %c1 = arith.constant 1 : index
    %c0_16 = arith.constant 0 : index
    %c0_17 = arith.constant 0 : index
    %17 = vector.load %arg2[%c1, %c0_16, %c0_17] : memref<49x8x256xf32, #tpu.memory_space<vmem>>, vector<1x8x256xf32>
    %18 = vector.shape_cast %17 : vector<1x8x256xf32> to vector<8x256xf32>
    %19 = arith.mulf %18, %16 : vector<8x256xf32>
    %20 = arith.addf %15, %19 : vector<8x256xf32>
    %c49_i32 = arith.constant 49 : i32
    %21 = tpu.dynamic_rotate %9 by %c49_i32 dim 1 : vector<8x256xf32>, i32 -> vector<8x256xf32>
    %c2_18 = arith.constant 2 : index
    %c0_19 = arith.constant 0 : index
    %c0_20 = arith.constant 0 : index
    %22 = vector.load %arg2[%c2_18, %c0_19, %c0_20] : memref<49x8x256xf32, #tpu.memory_space<vmem>>, vector<1x8x256xf32>
    %23 = vector.shape_cast %22 : vector<1x8x256xf32> to vector<8x256xf32>
    %24 = arith.mulf %23, %21 : vector<8x256xf32>
    %25 = arith.addf %20, %24 : vector<8x256xf32>
    %c48_i32 = arith.constant 48 : i32
    %26 = tpu.dynamic_rotate %9 by %c48_i32 dim 1 : vector<8x256xf32>, i32 -> vector<8x256xf32>
    %c3 = arith.constant 3 : index
    %c0_21 = arith.constant 0 : index
    %c0_22 = arith.constant 0 : index
    %27 = vector.load %arg2[%c3, %c0_21, %c0_22] : memref<49x8x256xf32, #tpu.memory_space<vmem>>, vector<1x8x256xf32>
    %28 = vector.shape_cast %27 : vector<1x8x256xf32> to vector<8x256xf32>
    %29 = arith.mulf %28, %26 : vector<8x256xf32>
    %30 = arith.addf %25, %29 : vector<8x256xf32>
    %c47_i32 = arith.constant 47 : i32
    %31 = tpu.dynamic_rotate %9 by %c47_i32 dim 1 : vector<8x256xf32>, i32 -> vector<8x256xf32>
    %c4 = arith.constant 4 : index
    %c0_23 = arith.constant 0 : index
    %c0_24 = arith.constant 0 : index
    %32 = vector.load %arg2[%c4, %c0_23, %c0_24] : memref<49x8x256xf32, #tpu.memory_space<vmem>>, vector<1x8x256xf32>
    %33 = vector.shape_cast %32 : vector<1x8x256xf32> to vector<8x256xf32>
    %34 = arith.mulf %33, %31 : vector<8x256xf32>
    %35 = arith.addf %30, %34 : vector<8x256xf32>
    %c46_i32 = arith.constant 46 : i32
    %36 = tpu.dynamic_rotate %9 by %c46_i32 dim 1 : vector<8x256xf32>, i32 -> vector<8x256xf32>
    %c5 = arith.constant 5 : index
    %c0_25 = arith.constant 0 : index
    %c0_26 = arith.constant 0 : index
    %37 = vector.load %arg2[%c5, %c0_25, %c0_26] : memref<49x8x256xf32, #tpu.memory_space<vmem>>, vector<1x8x256xf32>
    %38 = vector.shape_cast %37 : vector<1x8x256xf32> to vector<8x256xf32>
    %39 = arith.mulf %38, %36 : vector<8x256xf32>
    %40 = arith.addf %35, %39 : vector<8x256xf32>
    %c45_i32 = arith.constant 45 : i32
    %41 = tpu.dynamic_rotate %9 by %c45_i32 dim 1 : vector<8x256xf32>, i32 -> vector<8x256xf32>
    %c6 = arith.constant 6 : index
    %c0_27 = arith.constant 0 : index
    %c0_28 = arith.constant 0 : index
    %42 = vector.load %arg2[%c6, %c0_27, %c0_28] : memref<49x8x256xf32, #tpu.memory_space<vmem>>, vector<1x8x256xf32>
    %43 = vector.shape_cast %42 : vector<1x8x256xf32> to vector<8x256xf32>
    %44 = arith.mulf %43, %41 : vector<8x256xf32>
    %45 = arith.addf %40, %44 : vector<8x256xf32>
    %c35_i32 = arith.constant 35 : i32
    %46 = tpu.dynamic_rotate %9 by %c35_i32 dim 1 : vector<8x256xf32>, i32 -> vector<8x256xf32>
    %c7 = arith.constant 7 : index
    %c0_29 = arith.constant 0 : index
    %c0_30 = arith.constant 0 : index
    %47 = vector.load %arg2[%c7, %c0_29, %c0_30] : memref<49x8x256xf32, #tpu.memory_space<vmem>>, vector<1x8x256xf32>
    %48 = vector.shape_cast %47 : vector<1x8x256xf32> to vector<8x256xf32>
    %49 = arith.mulf %48, %46 : vector<8x256xf32>
    %50 = arith.addf %45, %49 : vector<8x256xf32>
    %c34_i32 = arith.constant 34 : i32
    %51 = tpu.dynamic_rotate %9 by %c34_i32 dim 1 : vector<8x256xf32>, i32 -> vector<8x256xf32>
    %c8 = arith.constant 8 : index
    %c0_31 = arith.constant 0 : index
    %c0_32 = arith.constant 0 : index
    %52 = vector.load %arg2[%c8, %c0_31, %c0_32] : memref<49x8x256xf32, #tpu.memory_space<vmem>>, vector<1x8x256xf32>
    %53 = vector.shape_cast %52 : vector<1x8x256xf32> to vector<8x256xf32>
    %54 = arith.mulf %53, %51 : vector<8x256xf32>
    %55 = arith.addf %50, %54 : vector<8x256xf32>
    %c33_i32 = arith.constant 33 : i32
    %56 = tpu.dynamic_rotate %9 by %c33_i32 dim 1 : vector<8x256xf32>, i32 -> vector<8x256xf32>
    %c9 = arith.constant 9 : index
    %c0_33 = arith.constant 0 : index
    %c0_34 = arith.constant 0 : index
    %57 = vector.load %arg2[%c9, %c0_33, %c0_34] : memref<49x8x256xf32, #tpu.memory_space<vmem>>, vector<1x8x256xf32>
    %58 = vector.shape_cast %57 : vector<1x8x256xf32> to vector<8x256xf32>
    %59 = arith.mulf %58, %56 : vector<8x256xf32>
    %60 = arith.addf %55, %59 : vector<8x256xf32>
    %c32_i32 = arith.constant 32 : i32
    %61 = tpu.dynamic_rotate %9 by %c32_i32 dim 1 : vector<8x256xf32>, i32 -> vector<8x256xf32>
    %c10 = arith.constant 10 : index
    %c0_35 = arith.constant 0 : index
    %c0_36 = arith.constant 0 : index
    %62 = vector.load %arg2[%c10, %c0_35, %c0_36] : memref<49x8x256xf32, #tpu.memory_space<vmem>>, vector<1x8x256xf32>
    %63 = vector.shape_cast %62 : vector<1x8x256xf32> to vector<8x256xf32>
    %64 = arith.mulf %63, %61 : vector<8x256xf32>
    %65 = arith.addf %60, %64 : vector<8x256xf32>
    %c31_i32 = arith.constant 31 : i32
    %66 = tpu.dynamic_rotate %9 by %c31_i32 dim 1 : vector<8x256xf32>, i32 -> vector<8x256xf32>
    %c11 = arith.constant 11 : index
    %c0_37 = arith.constant 0 : index
    %c0_38 = arith.constant 0 : index
    %67 = vector.load %arg2[%c11, %c0_37, %c0_38] : memref<49x8x256xf32, #tpu.memory_space<vmem>>, vector<1x8x256xf32>
    %68 = vector.shape_cast %67 : vector<1x8x256xf32> to vector<8x256xf32>
    %69 = arith.mulf %68, %66 : vector<8x256xf32>
    %70 = arith.addf %65, %69 : vector<8x256xf32>
    %c30_i32 = arith.constant 30 : i32
    %71 = tpu.dynamic_rotate %9 by %c30_i32 dim 1 : vector<8x256xf32>, i32 -> vector<8x256xf32>
    %c12 = arith.constant 12 : index
    %c0_39 = arith.constant 0 : index
    %c0_40 = arith.constant 0 : index
    %72 = vector.load %arg2[%c12, %c0_39, %c0_40] : memref<49x8x256xf32, #tpu.memory_space<vmem>>, vector<1x8x256xf32>
    %73 = vector.shape_cast %72 : vector<1x8x256xf32> to vector<8x256xf32>
    %74 = arith.mulf %73, %71 : vector<8x256xf32>
    %75 = arith.addf %70, %74 : vector<8x256xf32>
    %c29_i32 = arith.constant 29 : i32
    %76 = tpu.dynamic_rotate %9 by %c29_i32 dim 1 : vector<8x256xf32>, i32 -> vector<8x256xf32>
    %c13 = arith.constant 13 : index
    %c0_41 = arith.constant 0 : index
    %c0_42 = arith.constant 0 : index
    %77 = vector.load %arg2[%c13, %c0_41, %c0_42] : memref<49x8x256xf32, #tpu.memory_space<vmem>>, vector<1x8x256xf32>
    %78 = vector.shape_cast %77 : vector<1x8x256xf32> to vector<8x256xf32>
    %79 = arith.mulf %78, %76 : vector<8x256xf32>
    %80 = arith.addf %75, %79 : vector<8x256xf32>
    %c19_i32 = arith.constant 19 : i32
    %81 = tpu.dynamic_rotate %9 by %c19_i32 dim 1 : vector<8x256xf32>, i32 -> vector<8x256xf32>
    %c14 = arith.constant 14 : index
    %c0_43 = arith.constant 0 : index
    %c0_44 = arith.constant 0 : index
    %82 = vector.load %arg2[%c14, %c0_43, %c0_44] : memref<49x8x256xf32, #tpu.memory_space<vmem>>, vector<1x8x256xf32>
    %83 = vector.shape_cast %82 : vector<1x8x256xf32> to vector<8x256xf32>
    %84 = arith.mulf %83, %81 : vector<8x256xf32>
    %85 = arith.addf %80, %84 : vector<8x256xf32>
    %c18_i32 = arith.constant 18 : i32
    %86 = tpu.dynamic_rotate %9 by %c18_i32 dim 1 : vector<8x256xf32>, i32 -> vector<8x256xf32>
    %c15 = arith.constant 15 : index
    %c0_45 = arith.constant 0 : index
    %c0_46 = arith.constant 0 : index
    %87 = vector.load %arg2[%c15, %c0_45, %c0_46] : memref<49x8x256xf32, #tpu.memory_space<vmem>>, vector<1x8x256xf32>
    %88 = vector.shape_cast %87 : vector<1x8x256xf32> to vector<8x256xf32>
    %89 = arith.mulf %88, %86 : vector<8x256xf32>
    %90 = arith.addf %85, %89 : vector<8x256xf32>
    %c17_i32 = arith.constant 17 : i32
    %91 = tpu.dynamic_rotate %9 by %c17_i32 dim 1 : vector<8x256xf32>, i32 -> vector<8x256xf32>
    %c16 = arith.constant 16 : index
    %c0_47 = arith.constant 0 : index
    %c0_48 = arith.constant 0 : index
    %92 = vector.load %arg2[%c16, %c0_47, %c0_48] : memref<49x8x256xf32, #tpu.memory_space<vmem>>, vector<1x8x256xf32>
    %93 = vector.shape_cast %92 : vector<1x8x256xf32> to vector<8x256xf32>
    %94 = arith.mulf %93, %91 : vector<8x256xf32>
    %95 = arith.addf %90, %94 : vector<8x256xf32>
    %c16_i32 = arith.constant 16 : i32
    %96 = tpu.dynamic_rotate %9 by %c16_i32 dim 1 : vector<8x256xf32>, i32 -> vector<8x256xf32>
    %c17 = arith.constant 17 : index
    %c0_49 = arith.constant 0 : index
    %c0_50 = arith.constant 0 : index
    %97 = vector.load %arg2[%c17, %c0_49, %c0_50] : memref<49x8x256xf32, #tpu.memory_space<vmem>>, vector<1x8x256xf32>
    %98 = vector.shape_cast %97 : vector<1x8x256xf32> to vector<8x256xf32>
    %99 = arith.mulf %98, %96 : vector<8x256xf32>
    %100 = arith.addf %95, %99 : vector<8x256xf32>
    %c15_i32 = arith.constant 15 : i32
    %101 = tpu.dynamic_rotate %9 by %c15_i32 dim 1 : vector<8x256xf32>, i32 -> vector<8x256xf32>
    %c18 = arith.constant 18 : index
    %c0_51 = arith.constant 0 : index
    %c0_52 = arith.constant 0 : index
    %102 = vector.load %arg2[%c18, %c0_51, %c0_52] : memref<49x8x256xf32, #tpu.memory_space<vmem>>, vector<1x8x256xf32>
    %103 = vector.shape_cast %102 : vector<1x8x256xf32> to vector<8x256xf32>
    %104 = arith.mulf %103, %101 : vector<8x256xf32>
    %105 = arith.addf %100, %104 : vector<8x256xf32>
    %c14_i32 = arith.constant 14 : i32
    %106 = tpu.dynamic_rotate %9 by %c14_i32 dim 1 : vector<8x256xf32>, i32 -> vector<8x256xf32>
    %c19 = arith.constant 19 : index
    %c0_53 = arith.constant 0 : index
    %c0_54 = arith.constant 0 : index
    %107 = vector.load %arg2[%c19, %c0_53, %c0_54] : memref<49x8x256xf32, #tpu.memory_space<vmem>>, vector<1x8x256xf32>
    %108 = vector.shape_cast %107 : vector<1x8x256xf32> to vector<8x256xf32>
    %109 = arith.mulf %108, %106 : vector<8x256xf32>
    %110 = arith.addf %105, %109 : vector<8x256xf32>
    %c13_i32 = arith.constant 13 : i32
    %111 = tpu.dynamic_rotate %9 by %c13_i32 dim 1 : vector<8x256xf32>, i32 -> vector<8x256xf32>
    %c20 = arith.constant 20 : index
    %c0_55 = arith.constant 0 : index
    %c0_56 = arith.constant 0 : index
    %112 = vector.load %arg2[%c20, %c0_55, %c0_56] : memref<49x8x256xf32, #tpu.memory_space<vmem>>, vector<1x8x256xf32>
    %113 = vector.shape_cast %112 : vector<1x8x256xf32> to vector<8x256xf32>
    %114 = arith.mulf %113, %111 : vector<8x256xf32>
    %115 = arith.addf %110, %114 : vector<8x256xf32>
    %c3_i32 = arith.constant 3 : i32
    %116 = tpu.dynamic_rotate %9 by %c3_i32 dim 1 : vector<8x256xf32>, i32 -> vector<8x256xf32>
    %c21 = arith.constant 21 : index
    %c0_57 = arith.constant 0 : index
    %c0_58 = arith.constant 0 : index
    %117 = vector.load %arg2[%c21, %c0_57, %c0_58] : memref<49x8x256xf32, #tpu.memory_space<vmem>>, vector<1x8x256xf32>
    %118 = vector.shape_cast %117 : vector<1x8x256xf32> to vector<8x256xf32>
    %119 = arith.mulf %118, %116 : vector<8x256xf32>
    %120 = arith.addf %115, %119 : vector<8x256xf32>
    %c2_i32 = arith.constant 2 : i32
    %121 = tpu.dynamic_rotate %9 by %c2_i32 dim 1 : vector<8x256xf32>, i32 -> vector<8x256xf32>
    %c22 = arith.constant 22 : index
    %c0_59 = arith.constant 0 : index
    %c0_60 = arith.constant 0 : index
    %122 = vector.load %arg2[%c22, %c0_59, %c0_60] : memref<49x8x256xf32, #tpu.memory_space<vmem>>, vector<1x8x256xf32>
    %123 = vector.shape_cast %122 : vector<1x8x256xf32> to vector<8x256xf32>
    %124 = arith.mulf %123, %121 : vector<8x256xf32>
    %125 = arith.addf %120, %124 : vector<8x256xf32>
    %c1_i32 = arith.constant 1 : i32
    %126 = tpu.dynamic_rotate %9 by %c1_i32 dim 1 : vector<8x256xf32>, i32 -> vector<8x256xf32>
    %c23 = arith.constant 23 : index
    %c0_61 = arith.constant 0 : index
    %c0_62 = arith.constant 0 : index
    %127 = vector.load %arg2[%c23, %c0_61, %c0_62] : memref<49x8x256xf32, #tpu.memory_space<vmem>>, vector<1x8x256xf32>
    %128 = vector.shape_cast %127 : vector<1x8x256xf32> to vector<8x256xf32>
    %129 = arith.mulf %128, %126 : vector<8x256xf32>
    %130 = arith.addf %125, %129 : vector<8x256xf32>
    %c24 = arith.constant 24 : index
    %c0_63 = arith.constant 0 : index
    %c0_64 = arith.constant 0 : index
    %131 = vector.load %arg2[%c24, %c0_63, %c0_64] : memref<49x8x256xf32, #tpu.memory_space<vmem>>, vector<1x8x256xf32>
    %132 = vector.shape_cast %131 : vector<1x8x256xf32> to vector<8x256xf32>
    %133 = arith.mulf %132, %9 : vector<8x256xf32>
    %134 = arith.addf %130, %133 : vector<8x256xf32>
    %c255_i32 = arith.constant 255 : i32
    %135 = tpu.dynamic_rotate %9 by %c255_i32 dim 1 : vector<8x256xf32>, i32 -> vector<8x256xf32>
    %c25 = arith.constant 25 : index
    %c0_65 = arith.constant 0 : index
    %c0_66 = arith.constant 0 : index
    %136 = vector.load %arg2[%c25, %c0_65, %c0_66] : memref<49x8x256xf32, #tpu.memory_space<vmem>>, vector<1x8x256xf32>
    %137 = vector.shape_cast %136 : vector<1x8x256xf32> to vector<8x256xf32>
    %138 = arith.mulf %137, %135 : vector<8x256xf32>
    %139 = arith.addf %134, %138 : vector<8x256xf32>
    %c254_i32 = arith.constant 254 : i32
    %140 = tpu.dynamic_rotate %9 by %c254_i32 dim 1 : vector<8x256xf32>, i32 -> vector<8x256xf32>
    %c26 = arith.constant 26 : index
    %c0_67 = arith.constant 0 : index
    %c0_68 = arith.constant 0 : index
    %141 = vector.load %arg2[%c26, %c0_67, %c0_68] : memref<49x8x256xf32, #tpu.memory_space<vmem>>, vector<1x8x256xf32>
    %142 = vector.shape_cast %141 : vector<1x8x256xf32> to vector<8x256xf32>
    %143 = arith.mulf %142, %140 : vector<8x256xf32>
    %144 = arith.addf %139, %143 : vector<8x256xf32>
    %c253_i32 = arith.constant 253 : i32
    %145 = tpu.dynamic_rotate %9 by %c253_i32 dim 1 : vector<8x256xf32>, i32 -> vector<8x256xf32>
    %c27 = arith.constant 27 : index
    %c0_69 = arith.constant 0 : index
    %c0_70 = arith.constant 0 : index
    %146 = vector.load %arg2[%c27, %c0_69, %c0_70] : memref<49x8x256xf32, #tpu.memory_space<vmem>>, vector<1x8x256xf32>
    %147 = vector.shape_cast %146 : vector<1x8x256xf32> to vector<8x256xf32>
    %148 = arith.mulf %147, %145 : vector<8x256xf32>
    %149 = arith.addf %144, %148 : vector<8x256xf32>
    %c243_i32 = arith.constant 243 : i32
    %150 = tpu.dynamic_rotate %9 by %c243_i32 dim 1 : vector<8x256xf32>, i32 -> vector<8x256xf32>
    %c28 = arith.constant 28 : index
    %c0_71 = arith.constant 0 : index
    %c0_72 = arith.constant 0 : index
    %151 = vector.load %arg2[%c28, %c0_71, %c0_72] : memref<49x8x256xf32, #tpu.memory_space<vmem>>, vector<1x8x256xf32>
    %152 = vector.shape_cast %151 : vector<1x8x256xf32> to vector<8x256xf32>
    %153 = arith.mulf %152, %150 : vector<8x256xf32>
    %154 = arith.addf %149, %153 : vector<8x256xf32>
    %c242_i32 = arith.constant 242 : i32
    %155 = tpu.dynamic_rotate %9 by %c242_i32 dim 1 : vector<8x256xf32>, i32 -> vector<8x256xf32>
    %c29 = arith.constant 29 : index
    %c0_73 = arith.constant 0 : index
    %c0_74 = arith.constant 0 : index
    %156 = vector.load %arg2[%c29, %c0_73, %c0_74] : memref<49x8x256xf32, #tpu.memory_space<vmem>>, vector<1x8x256xf32>
    %157 = vector.shape_cast %156 : vector<1x8x256xf32> to vector<8x256xf32>
    %158 = arith.mulf %157, %155 : vector<8x256xf32>
    %159 = arith.addf %154, %158 : vector<8x256xf32>
    %c241_i32 = arith.constant 241 : i32
    %160 = tpu.dynamic_rotate %9 by %c241_i32 dim 1 : vector<8x256xf32>, i32 -> vector<8x256xf32>
    %c30 = arith.constant 30 : index
    %c0_75 = arith.constant 0 : index
    %c0_76 = arith.constant 0 : index
    %161 = vector.load %arg2[%c30, %c0_75, %c0_76] : memref<49x8x256xf32, #tpu.memory_space<vmem>>, vector<1x8x256xf32>
    %162 = vector.shape_cast %161 : vector<1x8x256xf32> to vector<8x256xf32>
    %163 = arith.mulf %162, %160 : vector<8x256xf32>
    %164 = arith.addf %159, %163 : vector<8x256xf32>
    %c240_i32 = arith.constant 240 : i32
    %165 = tpu.dynamic_rotate %9 by %c240_i32 dim 1 : vector<8x256xf32>, i32 -> vector<8x256xf32>
    %c31 = arith.constant 31 : index
    %c0_77 = arith.constant 0 : index
    %c0_78 = arith.constant 0 : index
    %166 = vector.load %arg2[%c31, %c0_77, %c0_78] : memref<49x8x256xf32, #tpu.memory_space<vmem>>, vector<1x8x256xf32>
    %167 = vector.shape_cast %166 : vector<1x8x256xf32> to vector<8x256xf32>
    %168 = arith.mulf %167, %165 : vector<8x256xf32>
    %169 = arith.addf %164, %168 : vector<8x256xf32>
    %c239_i32 = arith.constant 239 : i32
    %170 = tpu.dynamic_rotate %9 by %c239_i32 dim 1 : vector<8x256xf32>, i32 -> vector<8x256xf32>
    %c32 = arith.constant 32 : index
    %c0_79 = arith.constant 0 : index
    %c0_80 = arith.constant 0 : index
    %171 = vector.load %arg2[%c32, %c0_79, %c0_80] : memref<49x8x256xf32, #tpu.memory_space<vmem>>, vector<1x8x256xf32>
    %172 = vector.shape_cast %171 : vector<1x8x256xf32> to vector<8x256xf32>
    %173 = arith.mulf %172, %170 : vector<8x256xf32>
    %174 = arith.addf %169, %173 : vector<8x256xf32>
    %c238_i32 = arith.constant 238 : i32
    %175 = tpu.dynamic_rotate %9 by %c238_i32 dim 1 : vector<8x256xf32>, i32 -> vector<8x256xf32>
    %c33 = arith.constant 33 : index
    %c0_81 = arith.constant 0 : index
    %c0_82 = arith.constant 0 : index
    %176 = vector.load %arg2[%c33, %c0_81, %c0_82] : memref<49x8x256xf32, #tpu.memory_space<vmem>>, vector<1x8x256xf32>
    %177 = vector.shape_cast %176 : vector<1x8x256xf32> to vector<8x256xf32>
    %178 = arith.mulf %177, %175 : vector<8x256xf32>
    %179 = arith.addf %174, %178 : vector<8x256xf32>
    %c237_i32 = arith.constant 237 : i32
    %180 = tpu.dynamic_rotate %9 by %c237_i32 dim 1 : vector<8x256xf32>, i32 -> vector<8x256xf32>
    %c34 = arith.constant 34 : index
    %c0_83 = arith.constant 0 : index
    %c0_84 = arith.constant 0 : index
    %181 = vector.load %arg2[%c34, %c0_83, %c0_84] : memref<49x8x256xf32, #tpu.memory_space<vmem>>, vector<1x8x256xf32>
    %182 = vector.shape_cast %181 : vector<1x8x256xf32> to vector<8x256xf32>
    %183 = arith.mulf %182, %180 : vector<8x256xf32>
    %184 = arith.addf %179, %183 : vector<8x256xf32>
    %c227_i32 = arith.constant 227 : i32
    %185 = tpu.dynamic_rotate %9 by %c227_i32 dim 1 : vector<8x256xf32>, i32 -> vector<8x256xf32>
    %c35 = arith.constant 35 : index
    %c0_85 = arith.constant 0 : index
    %c0_86 = arith.constant 0 : index
    %186 = vector.load %arg2[%c35, %c0_85, %c0_86] : memref<49x8x256xf32, #tpu.memory_space<vmem>>, vector<1x8x256xf32>
    %187 = vector.shape_cast %186 : vector<1x8x256xf32> to vector<8x256xf32>
    %188 = arith.mulf %187, %185 : vector<8x256xf32>
    %189 = arith.addf %184, %188 : vector<8x256xf32>
    %c226_i32 = arith.constant 226 : i32
    %190 = tpu.dynamic_rotate %9 by %c226_i32 dim 1 : vector<8x256xf32>, i32 -> vector<8x256xf32>
    %c36 = arith.constant 36 : index
    %c0_87 = arith.constant 0 : index
    %c0_88 = arith.constant 0 : index
    %191 = vector.load %arg2[%c36, %c0_87, %c0_88] : memref<49x8x256xf32, #tpu.memory_space<vmem>>, vector<1x8x256xf32>
    %192 = vector.shape_cast %191 : vector<1x8x256xf32> to vector<8x256xf32>
    %193 = arith.mulf %192, %190 : vector<8x256xf32>
    %194 = arith.addf %189, %193 : vector<8x256xf32>
    %c225_i32 = arith.constant 225 : i32
    %195 = tpu.dynamic_rotate %9 by %c225_i32 dim 1 : vector<8x256xf32>, i32 -> vector<8x256xf32>
    %c37 = arith.constant 37 : index
    %c0_89 = arith.constant 0 : index
    %c0_90 = arith.constant 0 : index
    %196 = vector.load %arg2[%c37, %c0_89, %c0_90] : memref<49x8x256xf32, #tpu.memory_space<vmem>>, vector<1x8x256xf32>
    %197 = vector.shape_cast %196 : vector<1x8x256xf32> to vector<8x256xf32>
    %198 = arith.mulf %197, %195 : vector<8x256xf32>
    %199 = arith.addf %194, %198 : vector<8x256xf32>
    %c224_i32 = arith.constant 224 : i32
    %200 = tpu.dynamic_rotate %9 by %c224_i32 dim 1 : vector<8x256xf32>, i32 -> vector<8x256xf32>
    %c38 = arith.constant 38 : index
    %c0_91 = arith.constant 0 : index
    %c0_92 = arith.constant 0 : index
    %201 = vector.load %arg2[%c38, %c0_91, %c0_92] : memref<49x8x256xf32, #tpu.memory_space<vmem>>, vector<1x8x256xf32>
    %202 = vector.shape_cast %201 : vector<1x8x256xf32> to vector<8x256xf32>
    %203 = arith.mulf %202, %200 : vector<8x256xf32>
    %204 = arith.addf %199, %203 : vector<8x256xf32>
    %c223_i32 = arith.constant 223 : i32
    %205 = tpu.dynamic_rotate %9 by %c223_i32 dim 1 : vector<8x256xf32>, i32 -> vector<8x256xf32>
    %c39 = arith.constant 39 : index
    %c0_93 = arith.constant 0 : index
    %c0_94 = arith.constant 0 : index
    %206 = vector.load %arg2[%c39, %c0_93, %c0_94] : memref<49x8x256xf32, #tpu.memory_space<vmem>>, vector<1x8x256xf32>
    %207 = vector.shape_cast %206 : vector<1x8x256xf32> to vector<8x256xf32>
    %208 = arith.mulf %207, %205 : vector<8x256xf32>
    %209 = arith.addf %204, %208 : vector<8x256xf32>
    %c222_i32 = arith.constant 222 : i32
    %210 = tpu.dynamic_rotate %9 by %c222_i32 dim 1 : vector<8x256xf32>, i32 -> vector<8x256xf32>
    %c40 = arith.constant 40 : index
    %c0_95 = arith.constant 0 : index
    %c0_96 = arith.constant 0 : index
    %211 = vector.load %arg2[%c40, %c0_95, %c0_96] : memref<49x8x256xf32, #tpu.memory_space<vmem>>, vector<1x8x256xf32>
    %212 = vector.shape_cast %211 : vector<1x8x256xf32> to vector<8x256xf32>
    %213 = arith.mulf %212, %210 : vector<8x256xf32>
    %214 = arith.addf %209, %213 : vector<8x256xf32>
    %c221_i32 = arith.constant 221 : i32
    %215 = tpu.dynamic_rotate %9 by %c221_i32 dim 1 : vector<8x256xf32>, i32 -> vector<8x256xf32>
    %c41 = arith.constant 41 : index
    %c0_97 = arith.constant 0 : index
    %c0_98 = arith.constant 0 : index
    %216 = vector.load %arg2[%c41, %c0_97, %c0_98] : memref<49x8x256xf32, #tpu.memory_space<vmem>>, vector<1x8x256xf32>
    %217 = vector.shape_cast %216 : vector<1x8x256xf32> to vector<8x256xf32>
    %218 = arith.mulf %217, %215 : vector<8x256xf32>
    %219 = arith.addf %214, %218 : vector<8x256xf32>
    %c211_i32 = arith.constant 211 : i32
    %220 = tpu.dynamic_rotate %9 by %c211_i32 dim 1 : vector<8x256xf32>, i32 -> vector<8x256xf32>
    %c42 = arith.constant 42 : index
    %c0_99 = arith.constant 0 : index
    %c0_100 = arith.constant 0 : index
    %221 = vector.load %arg2[%c42, %c0_99, %c0_100] : memref<49x8x256xf32, #tpu.memory_space<vmem>>, vector<1x8x256xf32>
    %222 = vector.shape_cast %221 : vector<1x8x256xf32> to vector<8x256xf32>
    %223 = arith.mulf %222, %220 : vector<8x256xf32>
    %224 = arith.addf %219, %223 : vector<8x256xf32>
    %c210_i32 = arith.constant 210 : i32
    %225 = tpu.dynamic_rotate %9 by %c210_i32 dim 1 : vector<8x256xf32>, i32 -> vector<8x256xf32>
    %c43 = arith.constant 43 : index
    %c0_101 = arith.constant 0 : index
    %c0_102 = arith.constant 0 : index
    %226 = vector.load %arg2[%c43, %c0_101, %c0_102] : memref<49x8x256xf32, #tpu.memory_space<vmem>>, vector<1x8x256xf32>
    %227 = vector.shape_cast %226 : vector<1x8x256xf32> to vector<8x256xf32>
    %228 = arith.mulf %227, %225 : vector<8x256xf32>
    %229 = arith.addf %224, %228 : vector<8x256xf32>
    %c209_i32 = arith.constant 209 : i32
    %230 = tpu.dynamic_rotate %9 by %c209_i32 dim 1 : vector<8x256xf32>, i32 -> vector<8x256xf32>
    %c44 = arith.constant 44 : index
    %c0_103 = arith.constant 0 : index
    %c0_104 = arith.constant 0 : index
    %231 = vector.load %arg2[%c44, %c0_103, %c0_104] : memref<49x8x256xf32, #tpu.memory_space<vmem>>, vector<1x8x256xf32>
    %232 = vector.shape_cast %231 : vector<1x8x256xf32> to vector<8x256xf32>
    %233 = arith.mulf %232, %230 : vector<8x256xf32>
    %234 = arith.addf %229, %233 : vector<8x256xf32>
    %c208_i32 = arith.constant 208 : i32
    %235 = tpu.dynamic_rotate %9 by %c208_i32 dim 1 : vector<8x256xf32>, i32 -> vector<8x256xf32>
    %c45 = arith.constant 45 : index
    %c0_105 = arith.constant 0 : index
    %c0_106 = arith.constant 0 : index
    %236 = vector.load %arg2[%c45, %c0_105, %c0_106] : memref<49x8x256xf32, #tpu.memory_space<vmem>>, vector<1x8x256xf32>
    %237 = vector.shape_cast %236 : vector<1x8x256xf32> to vector<8x256xf32>
    %238 = arith.mulf %237, %235 : vector<8x256xf32>
    %239 = arith.addf %234, %238 : vector<8x256xf32>
    %c207_i32 = arith.constant 207 : i32
    %240 = tpu.dynamic_rotate %9 by %c207_i32 dim 1 : vector<8x256xf32>, i32 -> vector<8x256xf32>
    %c46 = arith.constant 46 : index
    %c0_107 = arith.constant 0 : index
    %c0_108 = arith.constant 0 : index
    %241 = vector.load %arg2[%c46, %c0_107, %c0_108] : memref<49x8x256xf32, #tpu.memory_space<vmem>>, vector<1x8x256xf32>
    %242 = vector.shape_cast %241 : vector<1x8x256xf32> to vector<8x256xf32>
    %243 = arith.mulf %242, %240 : vector<8x256xf32>
    %244 = arith.addf %239, %243 : vector<8x256xf32>
    %c206_i32 = arith.constant 206 : i32
    %245 = tpu.dynamic_rotate %9 by %c206_i32 dim 1 : vector<8x256xf32>, i32 -> vector<8x256xf32>
    %c47 = arith.constant 47 : index
    %c0_109 = arith.constant 0 : index
    %c0_110 = arith.constant 0 : index
    %246 = vector.load %arg2[%c47, %c0_109, %c0_110] : memref<49x8x256xf32, #tpu.memory_space<vmem>>, vector<1x8x256xf32>
    %247 = vector.shape_cast %246 : vector<1x8x256xf32> to vector<8x256xf32>
    %248 = arith.mulf %247, %245 : vector<8x256xf32>
    %249 = arith.addf %244, %248 : vector<8x256xf32>
    %c205_i32 = arith.constant 205 : i32
    %250 = tpu.dynamic_rotate %9 by %c205_i32 dim 1 : vector<8x256xf32>, i32 -> vector<8x256xf32>
    %c48 = arith.constant 48 : index
    %c0_111 = arith.constant 0 : index
    %c0_112 = arith.constant 0 : index
    %251 = vector.load %arg2[%c48, %c0_111, %c0_112] : memref<49x8x256xf32, #tpu.memory_space<vmem>>, vector<1x8x256xf32>
    %252 = vector.shape_cast %251 : vector<1x8x256xf32> to vector<8x256xf32>
    %253 = arith.mulf %252, %250 : vector<8x256xf32>
    %254 = arith.addf %249, %253 : vector<8x256xf32>
    %255 = vector.extract_strided_slice %254 {offsets = [0, 0], sizes = [2, 256], strides = [1, 1]} : vector<8x256xf32> to vector<2x256xf32>
    %256 = vector.extract_strided_slice %254 {offsets = [2, 0], sizes = [2, 256], strides = [1, 1]} : vector<8x256xf32> to vector<2x256xf32>
    %257 = arith.addf %255, %256 : vector<2x256xf32>
    %258 = arith.negf %257 : vector<2x256xf32>
    %259 = math.exp %258 : vector<2x256xf32>
    %cst_113 = arith.constant 1.000000e+00 : f32
    %260 = vector.broadcast %cst_113 : f32 to vector<2x256xf32>
    %261 = arith.addf %260, %259 : vector<2x256xf32>
    %262 = arith.divf %260, %261 : vector<2x256xf32>
    %263 = vector.shape_cast %262 : vector<2x256xf32> to vector<2x1x256xf32>
    %264 = vector.broadcast %263 : vector<2x1x256xf32> to vector<2x4x256xf32>
    %265 = arith.mulf %0, %264 : vector<2x4x256xf32>
    %c0_114 = arith.constant 0 : index
    %c0_115 = arith.constant 0 : index
    %c0_116 = arith.constant 0 : index
    %266 = vector.load %arg3[%c0_114, %c0_115, %c0_116] : memref<2x4x256xf32, #tpu.memory_space<vmem>>, vector<2x4x256xf32>
    tpu.vector_store %arg3[%c0_114, %c0_115, %c0_116], %265 {strides = array<i32>} : memref<2x4x256xf32, #tpu.memory_space<vmem>>, vector<2x4x256xf32>,
    return
  }
  func.func @transform_0(%arg0: i32) -> (i32, i32, i32) {
    %c0_i32 = arith.constant 0 : i32
    %c0_i32_0 = arith.constant 0 : i32
    %c0_i32_1 = arith.constant 0 : i32
    return %arg0, %c0_i32, %c0_i32_0 : i32, i32, i32
  }
  func.func @transform_1(%arg0: i32) -> (i32, i32, i32) {
    %c0_i32 = arith.constant 0 : i32
    %c0_i32_0 = arith.constant 0 : i32
    %c0_i32_1 = arith.constant 0 : i32
    %c0_i32_2 = arith.constant 0 : i32
    return %c0_i32, %c0_i32_0, %c0_i32_1 : i32, i32, i32
  }
  func.func @transform_2(%arg0: i32) -> (i32, i32, i32) {
    %c0_i32 = arith.constant 0 : i32
    %c0_i32_0 = arith.constant 0 : i32
    %c0_i32_1 = arith.constant 0 : i32
    return %arg0, %c0_i32, %c0_i32_0 : i32, i32, i32
  }
}

</mosaic_0001>

<bundles_post_ra>
// kernel: tpu_custom_call.1
= control target key start
LH: loop header
LB: loop body
LE: loop exit
PB: predicated region body
PF: predicated region fallthrough
CT: control target
= control target key end

     0   :  { %7 = vsyncpa [#allocation4], 0  ;;  %s1613_s0 = inlined_call_operand.hbm [shape: f32[2,4,256], index: 0, kind: input, shape index: {}]   ;;  %s1614_s1 = inlined_call_operand.hbm [shape: f32[49,8,256], index: 1, kind: input, shape index: {}]   ;;  %s1615_s2 = inlined_call_operand.hbm [shape: f32[2,4,256], index: 2, kind: output, shape index: {}]  }
   0x1   :  { %8 = vsyncpa [#allocation7], 0 }
   0x2   :  { %9 = vsyncpa [#allocation5], 0  ;;  %s1038_s9 = smov [#allocation3]  }
   0x3   :  { %s15_s10 = sshll.u32 %s1038_s9, 4  ;;  %s16_s10 = int_to_ptr.vmem [resolvable:$true] %s15_s10 }
   0x4   :  { %s980_s11 = scalar_lea.vmem %s16_s10, 256  ;;  %p985_p1 = scmp.lt.s32.totalorder %s16_s10, %s16_s10 }
   0x5   :  { %p981_p0 = scmp.ne.s32.totalorder %s16_s10, %s980_s11  ;;  %p986_p2 = scmp.lt.s32.totalorder %s980_s11, %s980_s11 }
   0x7   :  { %p987_p3 = por %p986_p2, %p985_p1 }
   0x9   :  { %p988_p4 = pnand %p987_p3, %p981_p0 }
   0xb   :  { %991 = shalt.err (!%p988_p4)
}
   0xc   :  { %s1039_s12 = smov 128   ;;  %s1040_s13 = smov 8  }
   0xd   :  { %21 = dma.hbm_to_vmem [thread:$0]  %s1613_s0, 256, %s16_s10, [#allocation4], %s1039_s12, %s1039_s12, %s1040_s13  }
   0xe   :  { %s1041_s16 = smov [#allocation6]  }
   0xf   :  { %s27_s17 = sshll.u32 %s1041_s16, 4  ;;  %s28_s17 = int_to_ptr.vmem [resolvable:$true] %s27_s17 }
  0x10   :  { %s1000_s18 = scalar_lea.vmem %s28_s17, 12544  ;;  %p1005_p6 = scmp.lt.s32.totalorder %s28_s17, %s28_s17 }
  0x11   :  { %p1001_p5 = scmp.ne.s32.totalorder %s28_s17, %s1000_s18  ;;  %p1006_p7 = scmp.lt.s32.totalorder %s1000_s18, %s1000_s18 }
  0x13   :  { %p1007_p8 = por %p1006_p7, %p1005_p6 }
  0x15   :  { %p1008_p9 = pnand %p1007_p8, %p1001_p5 }
  0x17   :  { %1011 = shalt.err (!%p1008_p9)
}
  0x18   :  { %s1042_s19 = smov 256   ;;  %s1043_s20 = smov 16  }
  0x19   :  { %33 = dma.hbm_to_vmem [thread:$0]  %s1614_s1, 12544, %s28_s17, [#allocation7], %s1042_s19, %s1042_s19, %s1043_s20  }
  0x1a   :  { %1032 = dma.done.wait [#allocation4], 256  }
  0x1b   :  { %1033 = vsyncadd [#allocation4], 4294967040 }
  0x1c   :  { %1034 = dma.done.wait [#allocation7], 12544  }
  0x1d   :  { %1035 = vsyncadd [#allocation7], 4294954752  ;;  %v1044_v0 = vmov 0.0   ;;  %vm48_vm0 = vcmask 1043456   ;;  %v40_v1 = vld [vmem:[#allocation3] sm:$0xff]  ;;  %v41_v2 = vld [vmem:[#allocation3 + $0x8] sm:$0xff] }
  0x1e   :  { %109 = vst [vmem:[#allocation2] sm:$0xff] %v1044_v0  ;;  %110 = vst [vmem:[#allocation2 + $0x8] sm:$0xff] %v1044_v0  ;;  %v49_v3 = vsel %vm48_vm0, %v40_v1, -inf  ;;  %v63_v4 = vsel %vm48_vm0, %v41_v2, -inf  ;;  %v77_v5 = vsel %vm48_vm0, %v40_v1, 0.0  ;;  %v91_v6 = vsel %vm48_vm0, %v41_v2, 0.0 }
  0x1f   :  { %v50_v7 = vrot.slane %v49_v3, 4  ;;  %v64_v8 = vrot.slane %v63_v4, 4  ;;  %v78_v9 = vrot.slane %v77_v5, 4  ;;  %v92_v10 = vrot.slane %v91_v6, 4  ;;  %s1045_s0 = smov 50   ;;  %s1046_s1 = smov 51  }
  0x20   :  { %vm115_vm1 = vcmask 1041409   ;;  %v44_v11 = vcombine.high %v40_v1, %v40_v1  ;;  %v45_v12 = vcombine.high %v41_v2, %v41_v2  ;;  %vm126_vm2 = vcmask 1043459   ;;  %s1047_s23 = smov 49   ;;  %s1048_s24 = smov 48  }
  0x21   :  { %v51_v13 = vmax.f32 %v49_v3, %v50_v7  ;;  %v65_v14 = vmax.f32 %v63_v4, %v64_v8  ;;  %v79_v15 = vadd.f32 %v78_v9, %v77_v5  ;;  %v93_v16 = vadd.f32 %v92_v10, %v91_v6  ;;  %s1049_s25 = smov 47   ;;  %s1050_s26 = smov 46  }
  0x22   :  { %v56_v17 = vsel %vm48_vm0, %v44_v11, -inf  ;;  %v70_v18 = vsel %vm48_vm0, %v45_v12, -inf  ;;  %v84_v19 = vsel %vm48_vm0, %v44_v11, 0.0  ;;  %v98_v20 = vsel %vm48_vm0, %v45_v12, 0.0  ;;  %s1051_s27 = smov 45   ;;  %s1052_s28 = smov 35  }
  0x23   :  { %v52_v21 = vrot.slane %v51_v13, 2  ;;  %v66_v22 = vrot.slane %v65_v14, 2  ;;  %v80_v23 = vrot.slane %v79_v15, 2  ;;  %v94_v24 = vrot.slane %v93_v16, 2  ;;  %s1053_s29 = smov 34   ;;  %s1054_s30 = smov 33  }
  0x24   :  { %v57_v25 = vrot.slane %v56_v17, 4  ;;  %v71_v26 = vrot.slane %v70_v18, 4  ;;  %v85_v27 = vrot.slane %v84_v19, 4  ;;  %v99_v28 = vrot.slane %v98_v20, 4  ;;  %s1055_s3 = smov 32   ;;  %s1056_s4 = smov 31  }
  0x25   :  { %v53_v29 = vmax.f32 %v51_v13, %v52_v21  ;;  %v67_v30 = vmax.f32 %v65_v14, %v66_v22  ;;  %v81_v31 = vadd.f32 %v80_v23, %v79_v15  ;;  %v95_v32 = vadd.f32 %v94_v24, %v93_v16  ;;  %s1057_s5 = smov 30   ;;  %s1058_s6 = smov 29  }
  0x26   :  { %v58_v33 = vmax.f32 %v56_v17, %v57_v25  ;;  %v72_v34 = vmax.f32 %v70_v18, %v71_v26  ;;  %v86_v35 = vadd.f32 %v85_v27, %v84_v19  ;;  %v100_v36 = vadd.f32 %v99_v28, %v98_v20  ;;  %s1059_s7 = smov 19   ;;  %s1060_s8 = smov 18  }
  0x27   :  { %v54_v37 = vrot.slane %v53_v29, 1  ;;  %v68_v38 = vrot.slane %v67_v30, 1  ;;  %v82_v39 = vrot.slane %v81_v31, 1  ;;  %v96_v40 = vrot.slane %v95_v32, 1  ;;  %s1061_s9 = smov 17   ;;  %s1062_s10 = smov 15  }
  0x28   :  { %v59_v41 = vrot.slane %v58_v33, 2  ;;  %v73_v42 = vrot.slane %v72_v34, 2  ;;  %v87_v43 = vrot.slane %v86_v35, 2  ;;  %v101_v44 = vrot.slane %v100_v36, 2  ;;  %s1063_s11 = smov 14   ;;  %s1064_s14 = smov 13  }
  0x29   :  { %v55_v45 = vmax.f32 %v53_v29, %v54_v37  ;;  %v69_v46 = vmax.f32 %v67_v30, %v68_v38  ;;  %v83_v47 = vadd.f32 %v82_v39, %v81_v31  ;;  %v97_v48 = vadd.f32 %v96_v40, %v95_v32  ;;  %s1065_s15 = smov 3   ;;  %s1066_s16 = smov 2   ;;  %v158_v37 = vld [vmem:[#allocation6 + $0x10] sm:$0xff]  ;;  %v159_v38 = vld [vmem:[#allocation6 + $0x18] sm:$0xff] }
  0x2a   :  { %v60_v49 = vmax.f32 %v58_v33, %v59_v41  ;;  %v74_v50 = vmax.f32 %v72_v34, %v73_v42  ;;  %v88_v51 = vadd.f32 %v87_v43, %v86_v35  ;;  %v102_v52 = vadd.f32 %v101_v44, %v100_v36  ;;  %s1067_s17 = smov 1   ;;  %s1068_s18 = smov 127   ;;  %v144_v41 = vld [vmem:[#allocation6] sm:$0xff]  ;;  %v145_v42 = vld [vmem:[#allocation6 + $0x8] sm:$0xff] }
  0x2b   :  { %v105_v53 = vmul.f32 0.25, %v83_v47  ;;  %v107_v54 = vmul.f32 0.25, %v97_v48  ;;  %v116_v55 = vsel %vm115_vm1, %v69_v46, %v55_v45  ;;  %s1069_s19 = smov 126   ;;  %s1071_s21 = smov 115   ;;  %v139_v7 = vlaneseq  ;;  %v172_v46 = vld [vmem:[#allocation6 + $0x20] sm:$0xff]  ;;  %v173_v47 = vld [vmem:[#allocation6 + $0x28] sm:$0xff] }
  0x2c   :  { %120 = vst [vmem:[#allocation2] sm:$0x3] %v116_v55  ;;  %v61_v56 = vrot.slane %v60_v49, 1  ;;  %v75_v57 = vrot.slane %v74_v50, 1  ;;  %v89_v58 = vrot.slane %v88_v51, 1  ;;  %v103_v59 = vrot.slane %v102_v52, 1 }
  0x2d   :  { %v127_v60 = vsel %vm126_vm2, %v107_v54, %v105_v53  ;;  %s1072_s22 = smov 114   ;;  %v1196_v8 = vand.u32 127, %v139_v7 }
  0x2e   :  { %131 = vst [vmem:[#allocation2] sm:$0xc] %v127_v60  ;;  %v62_v61 = vmax.f32 %v60_v49, %v61_v56  ;;  %v76_v62 = vmax.f32 %v74_v50, %v75_v57  ;;  %v90_v63 = vadd.f32 %v89_v58, %v88_v51  ;;  %v104_v0 = vadd.f32 %v103_v59, %v102_v52  ;;  %v186_v51 = vld [vmem:[#allocation6 + $0x30] sm:$0xff]  ;;  %v187_v52 = vld [vmem:[#allocation6 + $0x38] sm:$0xff] }
  0x2f   :  { %vm154_vm3 = vcmp.lt.s32.totalorder %v1196_v8, 50  ;;  %vm168_vm4 = vcmp.lt.s32.totalorder %v1196_v8, 49  ;;  %vm182_vm5 = vcmp.lt.s32.totalorder %v1196_v8, 48  ;;  %vm196_vm6 = vcmp.lt.s32.totalorder %v1196_v8, 47 }
  0x30   :  { %v106_v1 = vmul.f32 0.25, %v90_v63  ;;  %v108_v2 = vmul.f32 0.25, %v104_v0  ;;  %v117_v3 = vsel %vm115_vm1, %v76_v62, %v62_v61  ;;  %vm210_vm7 = vcmp.lt.s32.totalorder %v1196_v8, 46  ;;  %v200_v0 = vld [vmem:[#allocation6 + $0x40] sm:$0xff] }
  0x31   :  { %121 = vst [vmem:[#allocation2 + $0x8] sm:$0x3] %v117_v3  ;;  %vm224_vm8 = vcmp.lt.s32.totalorder %v1196_v8, 45  ;;  %vm238_vm9 = vcmp.lt.s32.totalorder %v1196_v8, 35  ;;  %vm141_vm10 = vcmp.lt.s32.totalorder %v1196_v8, 51  ;;  %vm252_vm11 = vcmp.lt.s32.totalorder %v1196_v8, 34 }
  0x32   :  { %v128_v4 = vsel %vm126_vm2, %v108_v2, %v106_v1  ;;  %vm266_vm12 = vcmp.lt.s32.totalorder %v1196_v8, 33  ;;  %v201_v1 = vld [vmem:[#allocation6 + $0x48] sm:$0xff]  ;;  %v214_v3 = vld [vmem:[#allocation6 + $0x50] sm:$0xff]  ;;  %vm280_vm13 = vcmp.lt.s32.totalorder %v1196_v8, 32  ;;  %vm294_vm14 = vcmp.lt.s32.totalorder %v1196_v8, 31 }
  0x33   :  { %132 = vst [vmem:[#allocation2 + $0x8] sm:$0xc] %v128_v4  ;;  %v215_v4 = vld [vmem:[#allocation6 + $0x58] sm:$0xff]  ;;  %vm308_vm15 = vcmp.lt.s32.totalorder %v1196_v8, 30  ;;  %vm322_vm0 = vcmp.lt.s32.totalorder %v1196_v8, 29  ;;  %vm336_vm1 = vcmp.lt.s32.totalorder %v1196_v8, 19 }
  0x34   :  { %vm350_vm2 = vcmp.lt.s32.totalorder %v1196_v8, 18 }
  0x35   :  { %v1131_v5 = vld [vmem:[#allocation2] sm:$0xff] }
  0x36   :  { %150 = vrot.lane.b32.xlu1 %v1131_v5, %s1045_s0  ;;  %135 = vrot.lane.b32.xlu0 %v1131_v5, %s1046_s1 }
  0x3a   :  { %164 = vrot.lane.b32.xlu0 %v1131_v5, %s1047_s23  ;;  %v1136_v6 = vld [vmem:[#allocation2 + $0x8] sm:$0xff] }
  0x3b   :  { %152 = vrot.lane.b32.xlu1 %v1136_v6, %s1045_s0  ;;  %s1073_s0 = smov 113  }
  0x3e   :  { %178 = vrot.lane.b32.xlu0 %v1131_v5, %s1048_s24 }
  0x3f   :  { %166 = vrot.lane.b32.xlu1 %v1136_v6, %s1047_s23  ;;  %s1075_s23 = smov 111  }
  0x42   :  { %192 = vrot.lane.b32.xlu0 %v1131_v5, %s1049_s25 }
  0x43   :  { %180 = vrot.lane.b32.xlu1 %v1136_v6, %s1048_s24  ;;  %s1076_s24 = smov 110  }
  0x46   :  { %206 = vrot.lane.b32.xlu0 %v1131_v5, %s1050_s26 }
  0x47   :  { %194 = vrot.lane.b32.xlu1 %v1136_v6, %s1049_s25  ;;  %s1077_s25 = smov 109  }
  0x4a   :  { %220 = vrot.lane.b32.xlu0 %v1131_v5, %s1051_s27 }
  0x4b   :  { %208 = vrot.lane.b32.xlu1 %v1136_v6, %s1050_s26  ;;  %s1078_s26 = smov 99  }
  0x4e   :  { %234 = vrot.lane.b32.xlu0 %v1131_v5, %s1052_s28 }
  0x4f   :  { %222 = vrot.lane.b32.xlu1 %v1136_v6, %s1051_s27  ;;  %s1079_s27 = smov 98  }
  0x52   :  { %248 = vrot.lane.b32.xlu0 %v1131_v5, %s1053_s29 }
  0x53   :  { %236 = vrot.lane.b32.xlu1 %v1136_v6, %s1052_s28  ;;  %s1080_s28 = smov 97  }
  0x56   :  { %137 = vrot.lane.b32.xlu0 %v1136_v6, %s1046_s1  ;;  %s1074_s1 = smov 112  }
  0x57   :  { %250 = vrot.lane.b32.xlu1 %v1136_v6, %s1053_s29  ;;  %s1081_s29 = smov 96  }
  0x5a   :  { %262 = vrot.lane.b32.xlu0 %v1131_v5, %s1054_s30 }
  0x5b   :  { %264 = vrot.lane.b32.xlu1 %v1136_v6, %s1054_s30  ;;  %s1082_s30 = smov 95  }
  0x5e   :  { %276 = vrot.lane.b32.xlu0 %v1131_v5, %s1055_s3 }
  0x5f   :  { %278 = vrot.lane.b32.xlu1 %v1136_v6, %s1055_s3  ;;  %s1083_s3 = smov 94  }
  0x62   :  { %290 = vrot.lane.b32.xlu0 %v1131_v5, %s1056_s4 }
  0x63   :  { %292 = vrot.lane.b32.xlu1 %v1136_v6, %s1056_s4  ;;  %s1084_s4 = smov 93  }
  0x66   :  { %304 = vrot.lane.b32.xlu0 %v1131_v5, %s1057_s5 }
  0x67   :  { %306 = vrot.lane.b32.xlu1 %v1136_v6, %s1057_s5  ;;  %s1085_s5 = smov 83  }
  0x6a   :  { %318 = vrot.lane.b32.xlu0 %v1131_v5, %s1058_s6 }
  0x6b   :  { %320 = vrot.lane.b32.xlu1 %v1136_v6, %s1058_s6  ;;  %s1086_s6 = smov 82  }
  0x6e   :  { %332 = vrot.lane.b32.xlu0 %v1131_v5, %s1059_s7 }
  0x6f   :  { %334 = vrot.lane.b32.xlu1 %v1136_v6, %s1059_s7  ;;  %s1087_s7 = smov 81  }
  0x72   :  { %346 = vrot.lane.b32.xlu0 %v1131_v5, %s1060_s8 }
  0x73   :  { %348 = vrot.lane.b32.xlu1 %v1136_v6, %s1060_s8  ;;  %s1088_s8 = smov 80  }
  0x76   :  { %360 = vrot.lane.b32.xlu0 %v1131_v5, %s1061_s9 }
  0x77   :  { %362 = vrot.lane.b32.xlu1 %v1136_v6, %s1061_s9  ;;  %s1089_s9 = smov 79  }
  0x7a   :  { %374 = vrot.lane.b32.xlu0 %v1131_v5, %s1043_s20 }
  0x7b   :  { %376 = vrot.lane.b32.xlu1 %v1136_v6, %s1043_s20  ;;  %s1070_s20 = smov 125  }
  0x7e   :  { %388 = vrot.lane.b32.xlu0 %v1131_v5, %s1062_s10 }
  0x7f   :  { %390 = vrot.lane.b32.xlu1 %v1136_v6, %s1062_s10  ;;  %s1090_s10 = smov 78  }
  0x82   :  { %402 = vrot.lane.b32.xlu0 %v1131_v5, %s1063_s11 }
  0x83   :  { %404 = vrot.lane.b32.xlu1 %v1136_v6, %s1063_s11  ;;  %s1091_s11 = smov 77  }
  0x86   :  { %416 = vrot.lane.b32.xlu0 %v1131_v5, %s1064_s14 }
  0x87   :  { %418 = vrot.lane.b32.xlu1 %v1136_v6, %s1064_s14  ;;  %s1093_s14 = smov [#allocation8]  }
  0x8a   :  { %430 = vrot.lane.b32.xlu0 %v1131_v5, %s1065_s15 }
  0x8b   :  { %432 = vrot.lane.b32.xlu1 %v1136_v6, %s1065_s15  ;;  %s889_s15 = sshll.u32 %s1093_s14, 4  ;;  %s890_s15 = int_to_ptr.vmem [resolvable:$true] %s889_s15 }
  0x8c   :  { %p1017_p11 = scmp.lt.s32.totalorder %s890_s15, %s890_s15 }
  0x8e   :  { %444 = vrot.lane.b32.xlu0 %v1131_v5, %s1066_s16 }
  0x8f   :  { %446 = vrot.lane.b32.xlu1 %v1136_v6, %s1066_s16  ;;  %s1012_s16 = scalar_lea.vmem %s890_s15, 256 }
  0x90   :  { %p1013_p10 = scmp.ne.s32.totalorder %s890_s15, %s1012_s16  ;;  %p1018_p12 = scmp.lt.s32.totalorder %s1012_s16, %s1012_s16 }
  0x92   :  { %458 = vrot.lane.b32.xlu0 %v1131_v5, %s1067_s17  ;;  %p1019_p13 = por %p1018_p12, %p1017_p11 }
  0x93   :  { %460 = vrot.lane.b32.xlu1 %v1136_v6, %s1067_s17 }
  0x94   :  { %p1020_p0 = pnand %p1019_p13, %p1013_p10 }
  0x96   :  { %479 = vrot.lane.b32.xlu0 %v1131_v5, %s1068_s18 }
  0x97   :  { %481 = vrot.lane.b32.xlu1 %v1136_v6, %s1068_s18 }
  0x9a   :  { %493 = vrot.lane.b32.xlu0 %v1131_v5, %s1069_s19 }
  0x9b   :  { %495 = vrot.lane.b32.xlu1 %v1136_v6, %s1069_s19 }
  0x9e   :  { %507 = vrot.lane.b32.xlu0 %v1131_v5, %s1070_s20 }
  0x9f   :  { %509 = vrot.lane.b32.xlu1 %v1136_v6, %s1070_s20 }
  0xa2   :  { %521 = vrot.lane.b32.xlu0 %v1131_v5, %s1071_s21 }
  0xa3   :  { %523 = vrot.lane.b32.xlu1 %v1136_v6, %s1071_s21 }
  0xa6   :  { %535 = vrot.lane.b32.xlu0 %v1131_v5, %s1072_s22 }
  0xa7   :  { %537 = vrot.lane.b32.xlu1 %v1136_v6, %s1072_s22 }
  0xa8   :  { %v151_v9 = vpop.permute.xlu1 %150  ;;  %v1198_v10 = vpop.permute.xlu0 %135 }
  0xaa   :  { %549 = vrot.lane.b32.xlu0 %v1131_v5, %s1073_s0 }
  0xab   :  { %551 = vrot.lane.b32.xlu1 %v1136_v6, %s1073_s0 }
  0xac   :  { %v165_v11 = vpop.permute.xlu0 %164 }
  0xad   :  { %v153_v12 = vpop.permute.xlu1 %152 }
  0xae   :  { %v155_v13 = vsel %vm154_vm3, %v151_v9, %v153_v12  ;;  %v156_v14 = vsel %vm154_vm3, %v153_v12, %v151_v9  ;;  %563 = vrot.lane.b32.xlu0 %v1131_v5, %s1074_s1  ;;  %vm364_vm3 = vcmp.lt.s32.totalorder %v1196_v8, 17 }
  0xaf   :  { %565 = vrot.lane.b32.xlu1 %v1136_v6, %s1074_s1  ;;  %v160_v44 = vmul.f32 %v158_v37, %v156_v14  ;;  %v161_v45 = vmul.f32 %v159_v38, %v155_v13  ;;  %v256_v38 = vld [vmem:[#allocation6 + $0x80] sm:$0xff] }
  0xb0   :  { %v179_v15 = vpop.permute.xlu0 %178 }
  0xb1   :  { %v167_v16 = vpop.permute.xlu1 %166 }
  0xb2   :  { %v1206_v17 = vsel %vm168_vm4, %v165_v11, %v167_v16  ;;  %v1208_v18 = vsel %vm168_vm4, %v167_v16, %v165_v11  ;;  %577 = vrot.lane.b32.xlu0 %v1131_v5, %s1075_s23  ;;  %vm378_vm4 = vcmp.lt.s32.totalorder %v1196_v8, 16 }
  0xb3   :  { %579 = vrot.lane.b32.xlu1 %v1136_v6, %s1075_s23  ;;  %v174_v57 = vmul.f32 %v172_v46, %v1208_v18  ;;  %v175_v58 = vmul.f32 %v173_v47, %v1206_v17  ;;  %v271_v46 = vld [vmem:[#allocation6 + $0x98] sm:$0xff] }
  0xb4   :  { %v193_v19 = vpop.permute.xlu0 %192 }
  0xb5   :  { %v181_v20 = vpop.permute.xlu1 %180 }
  0xb6   :  { %v1213_v21 = vsel %vm182_vm5, %v179_v15, %v181_v20  ;;  %v1215_v22 = vsel %vm182_vm5, %v181_v20, %v179_v15  ;;  %591 = vrot.lane.b32.xlu0 %v1131_v5, %s1076_s24  ;;  %v228_v20 = vld [vmem:[#allocation6 + $0x60] sm:$0xff]  ;;  %vm392_vm5 = vcmp.lt.s32.totalorder %v1196_v8, 15 }
  0xb7   :  { %593 = vrot.lane.b32.xlu1 %v1136_v6, %s1076_s24  ;;  %v188_v62 = vmul.f32 %v186_v51, %v1215_v22  ;;  %v189_v63 = vmul.f32 %v187_v52, %v1213_v21  ;;  %v229_v21 = vld [vmem:[#allocation6 + $0x68] sm:$0xff]  ;;  %v284_v52 = vld [vmem:[#allocation6 + $0xa0] sm:$0xff] }
  0xb8   :  { %v207_v23 = vpop.permute.xlu0 %206 }
  0xb9   :  { %v195_v24 = vpop.permute.xlu1 %194 }
  0xba   :  { %v1220_v25 = vsel %vm196_vm6, %v193_v19, %v195_v24  ;;  %v1222_v26 = vsel %vm196_vm6, %v195_v24, %v193_v19  ;;  %605 = vrot.lane.b32.xlu0 %v1131_v5, %s1077_s25  ;;  %v243_v24 = vld [vmem:[#allocation6 + $0x78] sm:$0xff]  ;;  %vm406_vm6 = vcmp.lt.s32.totalorder %v1196_v8, 14 }
  0xbb   :  { %607 = vrot.lane.b32.xlu1 %v1136_v6, %s1077_s25  ;;  %v202_v13 = vmul.f32 %v200_v0, %v1222_v26  ;;  %v203_v14 = vmul.f32 %v201_v1, %v1220_v25 }
  0xbc   :  { %v221_v27 = vpop.permute.xlu0 %220 }
  0xbd   :  { %v209_v28 = vpop.permute.xlu1 %208 }
  0xbe   :  { %v1227_v29 = vsel %vm210_vm7, %v207_v23, %v209_v28  ;;  %v1229_v30 = vsel %vm210_vm7, %v209_v28, %v207_v23  ;;  %619 = vrot.lane.b32.xlu0 %v1131_v5, %s1078_s26  ;;  %v242_v23 = vld [vmem:[#allocation6 + $0x70] sm:$0xff]  ;;  %vm420_vm7 = vcmp.lt.s32.totalorder %v1196_v8, 13 }
  0xbf   :  { %621 = vrot.lane.b32.xlu1 %v1136_v6, %s1078_s26  ;;  %v216_v18 = vmul.f32 %v214_v3, %v1229_v30  ;;  %v217_v19 = vmul.f32 %v215_v4, %v1227_v29  ;;  %v312_v4 = vld [vmem:[#allocation6 + $0xc0] sm:$0xff] }
  0xc0   :  { %v235_v31 = vpop.permute.xlu0 %234 }
  0xc1   :  { %v223_v32 = vpop.permute.xlu1 %222 }
  0xc2   :  { %v1234_v33 = vsel %vm224_vm8, %v221_v27, %v223_v32  ;;  %v1236_v34 = vsel %vm224_vm8, %v223_v32, %v221_v27  ;;  %633 = vrot.lane.b32.xlu0 %v1131_v5, %s1079_s27  ;;  %vm434_vm8 = vcmp.lt.s32.totalorder %v1196_v8, 3 }
  0xc3   :  { %635 = vrot.lane.b32.xlu1 %v1136_v6, %s1079_s27  ;;  %v230_v26 = vmul.f32 %v228_v20, %v1236_v34  ;;  %v231_v29 = vmul.f32 %v229_v21, %v1234_v33 }
  0xc4   :  { %v249_v35 = vpop.permute.xlu0 %248 }
  0xc5   :  { %v237_v36 = vpop.permute.xlu1 %236 }
  0xc6   :  { %v1241_v39 = vsel %vm238_vm9, %v235_v31, %v237_v36  ;;  %v1243_v40 = vsel %vm238_vm9, %v237_v36, %v235_v31  ;;  %647 = vrot.lane.b32.xlu0 %v1131_v5, %s1080_s28  ;;  %vm448_vm9 = vcmp.lt.s32.totalorder %v1196_v8, 2 }
  0xc7   :  { %649 = vrot.lane.b32.xlu1 %v1136_v6, %s1080_s28  ;;  %v244_v36 = vmul.f32 %v242_v23, %v1243_v40  ;;  %v245_v37 = vmul.f32 %v243_v24, %v1241_v39 }
  0xc8   :  { %v138_v43 = vpop.permute.xlu0 %137 }
  0xc9   :  { %v251_v48 = vpop.permute.xlu1 %250  ;;  %v142_v49 = vsel %vm141_vm10, %v1198_v10, %v138_v43  ;;  %v143_v50 = vsel %vm141_vm10, %v138_v43, %v1198_v10  ;;  %vm462_vm10 = vcmp.lt.s32.totalorder %v1196_v8, 1 }
  0xca   :  { %v1251_v53 = vsel %vm252_vm11, %v249_v35, %v251_v48  ;;  %v1253_v54 = vsel %vm252_vm11, %v251_v48, %v249_v35  ;;  %v146_v55 = vmul.f32 %v144_v41, %v143_v50  ;;  %v147_v56 = vmul.f32 %v145_v42, %v142_v49  ;;  %661 = vrot.lane.b32.xlu0 %v1131_v5, %s1081_s29  ;;  %v257_v41 = vld [vmem:[#allocation6 + $0x88] sm:$0xff] }
  0xcb   :  { %663 = vrot.lane.b32.xlu1 %v1136_v6, %s1081_s29  ;;  %v258_v34 = vmul.f32 %v256_v38, %v1253_v54  ;;  %v259_v39 = vmul.f32 %v257_v41, %v1251_v53  ;;  %vm483_vm11 = vcmp.lt.s32.totalorder %v1196_v8, 127 }
  0xcc   :  { %v162_v59 = vadd.f32 %v160_v44, %v146_v55  ;;  %v163_v60 = vadd.f32 %v161_v45, %v147_v56  ;;  %v263_v61 = vpop.permute.xlu0 %262  ;;  %v270_v45 = vld [vmem:[#allocation6 + $0x90] sm:$0xff]  ;;  %v285_v55 = vld [vmem:[#allocation6 + $0xa8] sm:$0xff] }
  0xcd   :  { %v265_v2 = vpop.permute.xlu1 %264 }
  0xce   :  { %v176_v9 = vadd.f32 %v174_v57, %v162_v59  ;;  %v177_v10 = vadd.f32 %v175_v58, %v163_v60  ;;  %v267_v11 = vsel %vm266_vm12, %v263_v61, %v265_v2  ;;  %v268_v12 = vsel %vm266_vm12, %v265_v2, %v263_v61  ;;  %675 = vrot.lane.b32.xlu0 %v1131_v5, %s1082_s30  ;;  %v298_v59 = vld [vmem:[#allocation6 + $0xb0] sm:$0xff]  ;;  %v299_v60 = vld [vmem:[#allocation6 + $0xb8] sm:$0xff] }
  0xcf   :  { %677 = vrot.lane.b32.xlu1 %v1136_v6, %s1082_s30  ;;  %v272_v50 = vmul.f32 %v270_v45, %v268_v12  ;;  %v273_v51 = vmul.f32 %v271_v46, %v267_v11  ;;  %vm497_vm12 = vcmp.lt.s32.totalorder %v1196_v8, 126 }
  0xd0   :  { %v190_v15 = vadd.f32 %v188_v62, %v176_v9  ;;  %v191_v16 = vadd.f32 %v189_v63, %v177_v10  ;;  %v277_v17 = vpop.permute.xlu0 %276  ;;  %v313_v9 = vld [vmem:[#allocation6 + $0xc8] sm:$0xff] }
  0xd1   :  { %v279_v22 = vpop.permute.xlu1 %278 }
  0xd2   :  { %v204_v27 = vadd.f32 %v202_v13, %v190_v15  ;;  %v205_v28 = vadd.f32 %v203_v14, %v191_v16  ;;  %v281_v31 = vsel %vm280_vm13, %v277_v17, %v279_v22  ;;  %v282_v25 = vsel %vm280_vm13, %v279_v22, %v277_v17  ;;  %689 = vrot.lane.b32.xlu0 %v1131_v5, %s1083_s3  ;;  %v326_v13 = vld [vmem:[#allocation6 + $0xd0] sm:$0xff]  ;;  %v327_v14 = vld [vmem:[#allocation6 + $0xd8] sm:$0xff] }
  0xd3   :  { %691 = vrot.lane.b32.xlu1 %v1136_v6, %s1083_s3  ;;  %v286_v63 = vmul.f32 %v284_v52, %v282_v25  ;;  %v287_v0 = vmul.f32 %v285_v55, %v281_v31  ;;  %vm511_vm13 = vcmp.lt.s32.totalorder %v1196_v8, 125 }
  0xd4   :  { %v218_v30 = vadd.f32 %v216_v18, %v204_v27  ;;  %v219_v32 = vadd.f32 %v217_v19, %v205_v28  ;;  %v291_v35 = vpop.permute.xlu0 %290  ;;  %v340_v27 = vld [vmem:[#allocation6 + $0xe0] sm:$0xff]  ;;  %v341_v28 = vld [vmem:[#allocation6 + $0xe8] sm:$0xff] }
  0xd5   :  { %v293_v42 = vpop.permute.xlu1 %292 }
  0xd6   :  { %v232_v43 = vadd.f32 %v230_v26, %v218_v30  ;;  %v233_v44 = vadd.f32 %v231_v29, %v219_v32  ;;  %v295_v47 = vsel %vm294_vm14, %v291_v35, %v293_v42  ;;  %v296_v33 = vsel %vm294_vm14, %v293_v42, %v291_v35  ;;  %703 = vrot.lane.b32.xlu0 %v1131_v5, %s1084_s4 }
  0xd7   :  { %705 = vrot.lane.b32.xlu1 %v1136_v6, %s1084_s4  ;;  %v300_v2 = vmul.f32 %v298_v59, %v296_v33  ;;  %v301_v3 = vmul.f32 %v299_v60, %v295_v47  ;;  %vm525_vm14 = vcmp.lt.s32.totalorder %v1196_v8, 115 }
  0xd8   :  { %v246_v40 = vadd.f32 %v244_v36, %v232_v43  ;;  %v247_v48 = vadd.f32 %v245_v37, %v233_v44  ;;  %v305_v49 = vpop.permute.xlu0 %304 }
  0xd9   :  { %v307_v56 = vpop.permute.xlu1 %306 }
  0xda   :  { %v260_v57 = vadd.f32 %v258_v34, %v246_v40  ;;  %v261_v58 = vadd.f32 %v259_v39, %v247_v48  ;;  %v309_v61 = vsel %vm308_vm15, %v305_v49, %v307_v56  ;;  %v310_v54 = vsel %vm308_vm15, %v307_v56, %v305_v49  ;;  %717 = vrot.lane.b32.xlu0 %v1131_v5, %s1085_s5 }
  0xdb   :  { %719 = vrot.lane.b32.xlu1 %v1136_v6, %s1085_s5  ;;  %v314_v19 = vmul.f32 %v312_v4, %v310_v54  ;;  %v315_v20 = vmul.f32 %v313_v9, %v309_v61  ;;  %vm539_vm15 = vcmp.lt.s32.totalorder %v1196_v8, 114 }
  0xdc   :  { %v274_v53 = vadd.f32 %v272_v50, %v260_v57  ;;  %v275_v62 = vadd.f32 %v273_v51, %v261_v58  ;;  %v319_v1 = vpop.permute.xlu0 %318 }
  0xdd   :  { %v321_v10 = vpop.permute.xlu1 %320 }
  0xde   :  { %v288_v11 = vadd.f32 %v286_v63, %v274_v53  ;;  %v289_v12 = vadd.f32 %v287_v0, %v275_v62  ;;  %v323_v15 = vsel %vm322_vm0, %v319_v1, %v321_v10  ;;  %v324_v16 = vsel %vm322_vm0, %v321_v10, %v319_v1  ;;  %731 = vrot.lane.b32.xlu0 %v1131_v5, %s1086_s6  ;;  %v354_v1 = vld [vmem:[#allocation6 + $0xf0] sm:$0xff] }
  0xdf   :  { %733 = vrot.lane.b32.xlu1 %v1136_v6, %s1086_s6  ;;  %v328_v22 = vmul.f32 %v326_v13, %v324_v16  ;;  %v329_v23 = vmul.f32 %v327_v14, %v323_v15  ;;  %vm553_vm0 = vcmp.lt.s32.totalorder %v1196_v8, 113 }
  0xe0   :  { %v302_v17 = vadd.f32 %v300_v2, %v288_v11  ;;  %v303_v18 = vadd.f32 %v301_v3, %v289_v12  ;;  %v333_v21 = vpop.permute.xlu0 %332  ;;  %v355_v2 = vld [vmem:[#allocation6 + $0xf8] sm:$0xff]  ;;  %v368_v11 = vld [vmem:[#allocation6 + $0x100] sm:$0xff]  ;;  %v369_v12 = vld [vmem:[#allocation6 + $0x108] sm:$0xff] }
  0xe1   :  { %v335_v24 = vpop.permute.xlu1 %334 }
  0xe2   :  { %v316_v31 = vadd.f32 %v314_v19, %v302_v17  ;;  %v317_v25 = vadd.f32 %v315_v20, %v303_v18  ;;  %v337_v26 = vsel %vm336_vm1, %v333_v21, %v335_v24  ;;  %v338_v29 = vsel %vm336_vm1, %v335_v24, %v333_v21  ;;  %745 = vrot.lane.b32.xlu0 %v1131_v5, %s1087_s7  ;;  %v382_v17 = vld [vmem:[#allocation6 + $0x110] sm:$0xff]  ;;  %v383_v18 = vld [vmem:[#allocation6 + $0x118] sm:$0xff] }
  0xe3   :  { %747 = vrot.lane.b32.xlu1 %v1136_v6, %s1087_s7  ;;  %v342_v35 = vmul.f32 %v340_v27, %v338_v29  ;;  %v343_v36 = vmul.f32 %v341_v28, %v337_v26  ;;  %v396_v27 = vld [vmem:[#allocation6 + $0x120] sm:$0xff]  ;;  %v397_v28 = vld [vmem:[#allocation6 + $0x128] sm:$0xff]  ;;  %vm567_vm1 = vcmp.lt.s32.totalorder %v1196_v8, 112 }
  0xe4   :  { %v330_v30 = vadd.f32 %v328_v22, %v316_v31  ;;  %v331_v32 = vadd.f32 %v329_v23, %v317_v25  ;;  %v347_v37 = vpop.permute.xlu0 %346 }
  0xe5   :  { %v349_v38 = vpop.permute.xlu1 %348 }
  0xe6   :  { %v1309_v41 = vadd.f32 %v342_v35, %v330_v30  ;;  %v1311_v42 = vadd.f32 %v343_v36, %v331_v32  ;;  %759 = vrot.lane.b32.xlu0 %v1131_v5, %s1088_s8  ;;  %v351_v3 = vsel %vm350_vm2, %v347_v37, %v349_v38  ;;  %v352_v4 = vsel %vm350_vm2, %v349_v38, %v347_v37  ;;  %v410_v35 = vld [vmem:[#allocation6 + $0x130] sm:$0xff]  ;;  %v411_v36 = vld [vmem:[#allocation6 + $0x138] sm:$0xff] }
  0xe7   :  { %761 = vrot.lane.b32.xlu1 %v1136_v6, %s1088_s8  ;;  %v356_v15 = vmul.f32 %v354_v1, %v352_v4  ;;  %v357_v16 = vmul.f32 %v355_v2, %v351_v3  ;;  %v424_v1 = vld [vmem:[#allocation6 + $0x140] sm:$0xff]  ;;  %vm581_vm2 = vcmp.lt.s32.totalorder %v1196_v8, 111 }
  0xe8   :  { %v361_v43 = vpop.permute.xlu0 %360 }
  0xe9   :  { %v363_v44 = vpop.permute.xlu1 %362  ;;  %v358_v26 = vadd.f32 %v356_v15, %v1309_v41  ;;  %v359_v29 = vadd.f32 %v357_v16, %v1311_v42  ;;  %v425_v41 = vld [vmem:[#allocation6 + $0x148] sm:$0xff] }
  0xea   :  { %773 = vrot.lane.b32.xlu0 %v1131_v5, %s1089_s9  ;;  %v365_v13 = vsel %vm364_vm3, %v361_v43, %v363_v44  ;;  %v366_v14 = vsel %vm364_vm3, %v363_v44, %v361_v43  ;;  %vm595_vm3 = vcmp.lt.s32.totalorder %v1196_v8, 110 }
  0xeb   :  { %775 = vrot.lane.b32.xlu1 %v1136_v6, %s1089_s9  ;;  %v370_v22 = vmul.f32 %v368_v11, %v366_v14  ;;  %v371_v23 = vmul.f32 %v369_v12, %v365_v13  ;;  %v438_v11 = vld [vmem:[#allocation6 + $0x150] sm:$0xff]  ;;  %v439_v12 = vld [vmem:[#allocation6 + $0x158] sm:$0xff] }
  0xec   :  { %v375_v45 = vpop.permute.xlu0 %374 }
  0xed   :  { %v377_v46 = vpop.permute.xlu1 %376  ;;  %v372_v44 = vadd.f32 %v370_v22, %v358_v26 }
  0xee   :  { %787 = vrot.lane.b32.xlu0 %v1131_v5, %s1090_s10  ;;  %v379_v19 = vsel %vm378_vm4, %v375_v45, %v377_v46  ;;  %v380_v20 = vsel %vm378_vm4, %v377_v46, %v375_v45  ;;  %v373_v45 = vadd.f32 %v371_v23, %v359_v29  ;;  %vm609_vm4 = vcmp.lt.s32.totalorder %v1196_v8, 109 }
  0xef   :  { %789 = vrot.lane.b32.xlu1 %v1136_v6, %s1090_s10  ;;  %v384_v30 = vmul.f32 %v382_v17, %v380_v20  ;;  %v385_v32 = vmul.f32 %v383_v18, %v379_v19  ;;  %v452_v19 = vld [vmem:[#allocation6 + $0x160] sm:$0xff]  ;;  %v453_v20 = vld [vmem:[#allocation6 + $0x168] sm:$0xff] }
  0xf0   :  { %v389_v47 = vpop.permute.xlu0 %388 }
  0xf1   :  { %v391_v33 = vpop.permute.xlu1 %390  ;;  %v387_v2 = vadd.f32 %v385_v32, %v373_v45 }
  0xf2   :  { %801 = vrot.lane.b32.xlu0 %v1131_v5, %s1091_s11  ;;  %v393_v31 = vsel %vm392_vm5, %v389_v47, %v391_v33  ;;  %v394_v25 = vsel %vm392_vm5, %v391_v33, %v389_v47  ;;  %vm623_vm5 = vcmp.lt.s32.totalorder %v1196_v8, 99 }
  0xf3   :  { %803 = vrot.lane.b32.xlu1 %v1136_v6, %s1091_s11  ;;  %v398_v46 = vmul.f32 %v396_v27, %v394_v25  ;;  %v399_v47 = vmul.f32 %v397_v28, %v393_v31  ;;  %v466_v31 = vld [vmem:[#allocation6 + $0x170] sm:$0xff]  ;;  %v467_v25 = vld [vmem:[#allocation6 + $0x178] sm:$0xff] }
  0xf4   :  { %v403_v34 = vpop.permute.xlu0 %402 }
  0xf5   :  { %v405_v39 = vpop.permute.xlu1 %404  ;;  %v401_v15 = vadd.f32 %v399_v47, %v387_v2  ;;  %v474_v47 = vld [vmem:[#allocation6 + $0x188] sm:$0xff] }
  0xf6   :  { %v407_v37 = vsel %vm406_vm6, %v403_v34, %v405_v39  ;;  %v408_v38 = vsel %vm406_vm6, %v405_v39, %v403_v34  ;;  %v386_v39 = vadd.f32 %v384_v30, %v372_v44  ;;  %v476_v2 = vmul.f32 %v474_v47, %v1136_v6  ;;  %v558_v47 = vld [vmem:[#allocation6 + $0x1e8] sm:$0xff] }
  0xf7   :  { %v412_v3 = vmul.f32 %v410_v35, %v408_v38  ;;  %v413_v4 = vmul.f32 %v411_v36, %v407_v37  ;;  %vm637_vm6 = vcmp.lt.s32.totalorder %v1196_v8, 98 }
  0xf8   :  { %v1321_v40 = vpop.permute.xlu0 %416 }
  0xf9   :  { %v1323_v48 = vpop.permute.xlu1 %418  ;;  %v415_v23 = vadd.f32 %v413_v4, %v401_v15  ;;  %v488_v4 = vld [vmem:[#allocation6 + $0x198] sm:$0xff] }
  0xfa   :  { %v421_v42 = vsel %vm420_vm7, %v1321_v40, %v1323_v48  ;;  %v422_v34 = vsel %vm420_vm7, %v1323_v48, %v1321_v40  ;;  %v400_v48 = vadd.f32 %v398_v46, %v386_v39  ;;  %v473_v46 = vld [vmem:[#allocation6 + $0x180] sm:$0xff]  ;;  %vm651_vm7 = vcmp.lt.s32.totalorder %v1196_v8, 97 }
  0xfb   :  { %v426_v16 = vmul.f32 %v424_v1, %v422_v34  ;;  %v427_v17 = vmul.f32 %v425_v41, %v421_v42 }
  0xfc   :  { %v1325_v49 = vpop.permute.xlu0 %430 }
  0xfd   :  { %v1327_v50 = vpop.permute.xlu1 %432 }
  0xfe   :  { %v435_v13 = vsel %vm434_vm8, %v1325_v49, %v1327_v50  ;;  %v436_v14 = vsel %vm434_vm8, %v1327_v50, %v1325_v49  ;;  %v414_v50 = vadd.f32 %v412_v3, %v400_v48  ;;  %v487_v3 = vld [vmem:[#allocation6 + $0x190] sm:$0xff]  ;;  %v502_v48 = vld [vmem:[#allocation6 + $0x1a8] sm:$0xff]  ;;  %vm665_vm8 = vcmp.lt.s32.totalorder %v1196_v8, 96 }
  0xff   :  { %v440_v27 = vmul.f32 %v438_v11, %v436_v14  ;;  %v441_v28 = vmul.f32 %v439_v12, %v435_v13 }
 0x100   :  { %v1329_v51 = vpop.permute.xlu0 %444  ;;  %v428_v32 = vadd.f32 %v426_v16, %v414_v50 }
 0x101   :  { %v1331_v52 = vpop.permute.xlu1 %446 }
 0x102   :  { %v449_v22 = vsel %vm448_vm9, %v1329_v51, %v1331_v52  ;;  %v450_v49 = vsel %vm448_vm9, %v1331_v52, %v1329_v51  ;;  %v429_v51 = vadd.f32 %v427_v17, %v415_v23  ;;  %v442_v37 = vadd.f32 %v440_v27, %v428_v32  ;;  %v543_v32 = vld [vmem:[#allocation6 + $0x1d0] sm:$0xff] }
 0x103   :  { %v454_v52 = vmul.f32 %v452_v19, %v450_v49  ;;  %v455_v35 = vmul.f32 %v453_v20, %v449_v22  ;;  %v516_v20 = vld [vmem:[#allocation6 + $0x1b8] sm:$0xff]  ;;  %vm679_vm9 = vcmp.lt.s32.totalorder %v1196_v8, 95 }
 0x104   :  { %v1333_v55 = vpop.permute.xlu0 %458  ;;  %v443_v38 = vadd.f32 %v441_v28, %v429_v51  ;;  %v530_v28 = vld [vmem:[#allocation6 + $0x1c8] sm:$0xff]  ;;  %v544_v51 = vld [vmem:[#allocation6 + $0x1d8] sm:$0xff] }
 0x105   :  { %v1335_v56 = vpop.permute.xlu1 %460  ;;  %v456_v41 = vadd.f32 %v454_v52, %v442_v37 }
 0x106   :  { %v463_v26 = vsel %vm462_vm10, %v1333_v55, %v1335_v56  ;;  %v464_v29 = vsel %vm462_vm10, %v1335_v56, %v1333_v55  ;;  %v457_v42 = vadd.f32 %v455_v35, %v443_v38  ;;  %v475_v56 = vmul.f32 %v473_v46, %v1131_v5  ;;  %v501_v5 = vld [vmem:[#allocation6 + $0x1a0] sm:$0xff] }
 0x107   :  { %v468_v44 = vmul.f32 %v466_v31, %v464_v29  ;;  %v469_v45 = vmul.f32 %v467_v25, %v463_v26  ;;  %v557_v46 = vld [vmem:[#allocation6 + $0x1e0] sm:$0xff]  ;;  %vm693_vm10 = vcmp.lt.s32.totalorder %v1196_v8, 94 }
 0x108   :  { %v1337_v57 = vpop.permute.xlu0 %479 }
 0x109   :  { %v1339_v58 = vpop.permute.xlu1 %481  ;;  %v470_v34 = vadd.f32 %v468_v44, %v456_v41  ;;  %v471_v39 = vadd.f32 %v469_v45, %v457_v42 }
 0x10a   :  { %v484_v11 = vsel %vm483_vm11, %v1337_v57, %v1339_v58  ;;  %v485_v12 = vsel %vm483_vm11, %v1339_v58, %v1337_v57  ;;  %v515_v58 = vld [vmem:[#allocation6 + $0x1b0] sm:$0xff]  ;;  %vm707_vm11 = vcmp.lt.s32.totalorder %v1196_v8, 93 }
 0x10b   :  { %v477_v16 = vadd.f32 %v475_v56, %v470_v34  ;;  %v478_v17 = vadd.f32 %v476_v2, %v471_v39  ;;  %v489_v19 = vmul.f32 %v487_v3, %v484_v11  ;;  %v490_v57 = vmul.f32 %v488_v4, %v485_v12  ;;  %v571_v39 = vld [vmem:[#allocation6 + $0x1f0] sm:$0xff]  ;;  %v572_v2 = vld [vmem:[#allocation6 + $0x1f8] sm:$0xff] }
 0x10c   :  { %v1341_v59 = vpop.permute.xlu0 %493 }
 0x10d   :  { %v1343_v60 = vpop.permute.xlu1 %495  ;;  %v492_v25 = vadd.f32 %v490_v57, %v478_v17 }
 0x10e   :  { %v498_v6 = vsel %vm497_vm12, %v1341_v59, %v1343_v60  ;;  %v499_v15 = vsel %vm497_vm12, %v1343_v60, %v1341_v59  ;;  %v529_v60 = vld [vmem:[#allocation6 + $0x1c0] sm:$0xff]  ;;  %vm721_vm12 = vcmp.lt.s32.totalorder %v1196_v8, 83 }
 0x10f   :  { %v503_v23 = vmul.f32 %v501_v5, %v498_v6  ;;  %v504_v27 = vmul.f32 %v502_v48, %v499_v15  ;;  %v585_v6 = vld [vmem:[#allocation6 + $0x200] sm:$0xff]  ;;  %v586_v15 = vld [vmem:[#allocation6 + $0x208] sm:$0xff] }
 0x110   :  { %v1345_v61 = vpop.permute.xlu0 %507 }
 0x111   :  { %v1347_v54 = vpop.permute.xlu1 %509 }
 0x112   :  { %v512_v22 = vsel %vm511_vm13, %v1345_v61, %v1347_v54  ;;  %v513_v49 = vsel %vm511_vm13, %v1347_v54, %v1345_v61  ;;  %v491_v54 = vadd.f32 %v489_v19, %v477_v16  ;;  %vm735_vm13 = vcmp.lt.s32.totalorder %v1196_v8, 82 }
 0x113   :  { %v517_v26 = vmul.f32 %v515_v58, %v512_v22  ;;  %v518_v29 = vmul.f32 %v516_v20, %v513_v49  ;;  %v599_v58 = vld [vmem:[#allocation6 + $0x210] sm:$0xff]  ;;  %v600_v20 = vld [vmem:[#allocation6 + $0x218] sm:$0xff] }
 0x114   :  { %v1349_v53 = vpop.permute.xlu0 %521  ;;  %v505_v38 = vadd.f32 %v503_v23, %v491_v54 }
 0x115   :  { %v1351_v62 = vpop.permute.xlu1 %523 }
 0x116   :  { %v526_v31 = vsel %vm525_vm14, %v1349_v53, %v1351_v62  ;;  %v527_v61 = vsel %vm525_vm14, %v1351_v62, %v1349_v53  ;;  %v506_v53 = vadd.f32 %v504_v27, %v492_v25  ;;  %vm749_vm14 = vcmp.lt.s32.totalorder %v1196_v8, 81 }
 0x117   :  { %v531_v62 = vmul.f32 %v529_v60, %v526_v31  ;;  %v532_v44 = vmul.f32 %v530_v28, %v527_v61  ;;  %v613_v31 = vld [vmem:[#allocation6 + $0x220] sm:$0xff]  ;;  %v614_v61 = vld [vmem:[#allocation6 + $0x228] sm:$0xff] }
 0x118   :  { %v1353_v63 = vpop.permute.xlu0 %535  ;;  %v520_v42 = vadd.f32 %v518_v29, %v506_v53 }
 0x119   :  { %v1356_v0 = vpop.permute.xlu1 %537 }
 0x11a   :  { %v540_v52 = vsel %vm539_vm15, %v1353_v63, %v1356_v0  ;;  %v541_v35 = vsel %vm539_vm15, %v1356_v0, %v1353_v63  ;;  %v519_v0 = vadd.f32 %v517_v26, %v505_v38  ;;  %v534_v11 = vadd.f32 %v532_v44, %v520_v42 }
 0x11b   :  { %v545_v56 = vmul.f32 %v543_v32, %v540_v52  ;;  %v546_v34 = vmul.f32 %v544_v51, %v541_v35  ;;  %v627_v32 = vld [vmem:[#allocation6 + $0x230] sm:$0xff]  ;;  %v628_v51 = vld [vmem:[#allocation6 + $0x238] sm:$0xff]  ;;  %vm763_vm15 = vcmp.lt.s32.totalorder %v1196_v8, 80 }
 0x11c   :  { %v1359_v9 = vpop.permute.xlu0 %549 }
 0x11d   :  { %v1362_v10 = vpop.permute.xlu1 %551  ;;  %v548_v17 = vadd.f32 %v546_v34, %v534_v11  ;;  %v656_v34 = vld [vmem:[#allocation6 + $0x258] sm:$0xff] }
 0x11e   :  { %v554_v41 = vsel %vm553_vm0, %v1359_v9, %v1362_v10  ;;  %v555_v63 = vsel %vm553_vm0, %v1362_v10, %v1359_v9  ;;  %v533_v10 = vadd.f32 %v531_v62, %v519_v0  ;;  %vm777_vm0 = vcmp.lt.s32.totalorder %v1196_v8, 79 }
 0x11f   :  { %v559_v12 = vmul.f32 %v557_v46, %v554_v41  ;;  %v560_v5 = vmul.f32 %v558_v47, %v555_v63  ;;  %v641_v46 = vld [vmem:[#allocation6 + $0x240] sm:$0xff]  ;;  %v642_v47 = vld [vmem:[#allocation6 + $0x248] sm:$0xff] }
 0x120   :  { %v1365_v21 = vpop.permute.xlu0 %563 }
 0x121   :  { %v1368_v24 = vpop.permute.xlu1 %565  ;;  %v562_v23 = vadd.f32 %v560_v5, %v548_v17  ;;  %v670_v5 = vld [vmem:[#allocation6 + $0x268] sm:$0xff]  ;;  %v684_v17 = vld [vmem:[#allocation6 + $0x278] sm:$0xff] }
 0x122   :  { %v568_v3 = vsel %vm567_vm1, %v1365_v21, %v1368_v24  ;;  %v569_v4 = vsel %vm567_vm1, %v1368_v24, %v1365_v21  ;;  %v547_v24 = vadd.f32 %v545_v56, %v533_v10  ;;  %v655_v56 = vld [vmem:[#allocation6 + $0x250] sm:$0xff]  ;;  %vm791_vm1 = vcmp.lt.s32.totalorder %v1196_v8, 78 }
 0x123   :  { %v573_v19 = vmul.f32 %v571_v39, %v568_v3  ;;  %v574_v57 = vmul.f32 %v572_v2, %v569_v4 }
 0x124   :  { %v1374_v43 = vpop.permute.xlu0 %577 }
 0x125   :  { %v1376_v33 = vpop.permute.xlu1 %579  ;;  %v576_v25 = vadd.f32 %v574_v57, %v562_v23  ;;  %v698_v23 = vld [vmem:[#allocation6 + $0x288] sm:$0xff] }
 0x126   :  { %v582_v16 = vsel %vm581_vm2, %v1374_v43, %v1376_v33  ;;  %v583_v21 = vsel %vm581_vm2, %v1376_v33, %v1374_v43  ;;  %v561_v33 = vadd.f32 %v559_v12, %v547_v24  ;;  %v669_v12 = vld [vmem:[#allocation6 + $0x260] sm:$0xff]  ;;  %v683_v24 = vld [vmem:[#allocation6 + $0x270] sm:$0xff]  ;;  %vm805_vm2 = vcmp.lt.s32.totalorder %v1196_v8, 77 }
 0x127   :  { %v587_v27 = vmul.f32 %v585_v6, %v582_v16  ;;  %v588_v60 = vmul.f32 %v586_v15, %v583_v21 }
 0x128   :  { %v1396_v40 = vpop.permute.xlu0 %591 }
 0x129   :  { %v1398_v18 = vpop.permute.xlu1 %593  ;;  %v590_v38 = vadd.f32 %v588_v60, %v576_v25 }
 0x12a   :  { %v596_v22 = vsel %vm595_vm3, %v1396_v40, %v1398_v18  ;;  %v597_v49 = vsel %vm595_vm3, %v1398_v18, %v1396_v40  ;;  %v575_v18 = vadd.f32 %v573_v19, %v561_v33  ;;  %v697_v33 = vld [vmem:[#allocation6 + $0x280] sm:$0xff] }
 0x12b   :  { %v601_v26 = vmul.f32 %v599_v58, %v596_v22  ;;  %v602_v29 = vmul.f32 %v600_v20, %v597_v49 }
 0x12c   :  { %v1416_v30 = vpop.permute.xlu0 %605 }
 0x12d   :  { %v1418_v36 = vpop.permute.xlu1 %607  ;;  %v604_v63 = vadd.f32 %v602_v29, %v590_v38 }
 0x12e   :  { %v610_v54 = vsel %vm609_vm4, %v1416_v30, %v1418_v36  ;;  %v611_v40 = vsel %vm609_vm4, %v1418_v36, %v1416_v30  ;;  %v589_v36 = vadd.f32 %v587_v27, %v575_v18 }
 0x12f   :  { %v615_v53 = vmul.f32 %v613_v31, %v610_v54  ;;  %v616_v62 = vmul.f32 %v614_v61, %v611_v40  ;;  %v711_v54 = vld [vmem:[#allocation6 + $0x290] sm:$0xff]  ;;  %v712_v40 = vld [vmem:[#allocation6 + $0x298] sm:$0xff] }
 0x130   :  { %v1420_v1 = vpop.permute.xlu0 %619 }
 0x131   :  { %v1423_v55 = vpop.permute.xlu1 %621  ;;  %v618_v3 = vadd.f32 %v616_v62, %v604_v63 }
 0x132   :  { %v624_v52 = vsel %vm623_vm5, %v1420_v1, %v1423_v55  ;;  %v625_v35 = vsel %vm623_vm5, %v1423_v55, %v1420_v1  ;;  %v603_v55 = vadd.f32 %v601_v26, %v589_v36 }
 0x133   :  { %v629_v0 = vmul.f32 %v627_v32, %v624_v52  ;;  %v630_v42 = vmul.f32 %v628_v51, %v625_v35  ;;  %v725_v52 = vld [vmem:[#allocation6 + $0x2a0] sm:$0xff]  ;;  %v726_v35 = vld [vmem:[#allocation6 + $0x2a8] sm:$0xff] }
 0x134   :  { %v1432_v13 = vpop.permute.xlu0 %633 }
 0x135   :  { %v1435_v14 = vpop.permute.xlu1 %635  ;;  %v632_v15 = vadd.f32 %v630_v42, %v618_v3 }
 0x136   :  { %v638_v41 = vsel %vm637_vm6, %v1432_v13, %v1435_v14  ;;  %v639_v1 = vsel %vm637_vm6, %v1435_v14, %v1432_v13  ;;  %v617_v14 = vadd.f32 %v615_v53, %v603_v55 }
 0x137   :  { %v643_v4 = vmul.f32 %v641_v46, %v638_v41  ;;  %v644_v10 = vmul.f32 %v642_v47, %v639_v1  ;;  %v739_v46 = vld [vmem:[#allocation6 + $0x2b0] sm:$0xff]  ;;  %v740_v47 = vld [vmem:[#allocation6 + $0x2b8] sm:$0xff] }
 0x138   :  { %v1446_v50 = vpop.permute.xlu0 %647 }
 0x139   :  { %v1449_v59 = vpop.permute.xlu1 %649  ;;  %v646_v58 = vadd.f32 %v644_v10, %v632_v15 }
 0x13a   :  { %v652_v39 = vsel %vm651_vm7, %v1446_v50, %v1449_v59  ;;  %v653_v2 = vsel %vm651_vm7, %v1449_v59, %v1446_v50  ;;  %v631_v59 = vadd.f32 %v629_v0, %v617_v14 }
 0x13b   :  { %v657_v16 = vmul.f32 %v655_v56, %v652_v39  ;;  %v658_v21 = vmul.f32 %v656_v34, %v653_v2  ;;  %v753_v39 = vld [vmem:[#allocation6 + $0x2c0] sm:$0xff]  ;;  %v754_v2 = vld [vmem:[#allocation6 + $0x2c8] sm:$0xff] }
 0x13c   :  { %v1465_v37 = vpop.permute.xlu0 %661 }
 0x13d   :  { %v1467_v45 = vpop.permute.xlu1 %663  ;;  %v660_v60 = vadd.f32 %v658_v21, %v646_v58 }
 0x13e   :  { %v666_v6 = vsel %vm665_vm8, %v1465_v37, %v1467_v45  ;;  %v667_v50 = vsel %vm665_vm8, %v1467_v45, %v1465_v37  ;;  %v645_v45 = vadd.f32 %v643_v4, %v631_v59 }
 0x13f   :  { %v671_v20 = vmul.f32 %v669_v12, %v666_v6  ;;  %v672_v22 = vmul.f32 %v670_v5, %v667_v50  ;;  %v767_v12 = vld [vmem:[#allocation6 + $0x2d0] sm:$0xff]  ;;  %v768_v5 = vld [vmem:[#allocation6 + $0x2d8] sm:$0xff] }
 0x140   :  { %v1487_v9 = vpop.permute.xlu0 %675 }
 0x141   :  { %v1489_v48 = vpop.permute.xlu1 %677  ;;  %v674_v32 = vadd.f32 %v672_v22, %v660_v60 }
 0x142   :  { %v680_v19 = vsel %vm679_vm9, %v1487_v9, %v1489_v48  ;;  %v681_v57 = vsel %vm679_vm9, %v1489_v48, %v1487_v9  ;;  %v659_v48 = vadd.f32 %v657_v16, %v645_v45 }
 0x143   :  { %v685_v31 = vmul.f32 %v683_v24, %v680_v19  ;;  %v686_v61 = vmul.f32 %v684_v17, %v681_v57  ;;  %v781_v19 = vld [vmem:[#allocation6 + $0x2e0] sm:$0xff]  ;;  %v782_v57 = vld [vmem:[#allocation6 + $0x2e8] sm:$0xff] }
 0x144   :  { %v1509_v43 = vpop.permute.xlu0 %689  ;;  %v673_v29 = vadd.f32 %v671_v20, %v659_v48 }
 0x145   :  { %v1511_v28 = vpop.permute.xlu1 %691 }
 0x146   :  { %v694_v27 = vsel %vm693_vm10, %v1509_v43, %v1511_v28  ;;  %v695_v9 = vsel %vm693_vm10, %v1511_v28, %v1509_v43  ;;  %v687_v53 = vadd.f32 %v685_v31, %v673_v29 }
 0x147   :  { %v699_v43 = vmul.f32 %v697_v33, %v694_v27  ;;  %v700_v28 = vmul.f32 %v698_v23, %v695_v9  ;;  %v795_v33 = vld [vmem:[#allocation6 + $0x2f0] sm:$0xff]  ;;  %v796_v23 = vld [vmem:[#allocation6 + $0x2f8] sm:$0xff] }
 0x148   :  { %v704_v30 = vpop.permute.xlu0 %703 }
 0x149   :  { %v706_v44 = vpop.permute.xlu1 %705  ;;  %v701_v63 = vadd.f32 %v699_v43, %v687_v53  ;;  %v810_v43 = vld [vmem:[#allocation6 + $0x308] sm:$0xff] }
 0x14a   :  { %v708_v18 = vsel %vm707_vm11, %v704_v30, %v706_v44  ;;  %v709_v25 = vsel %vm707_vm11, %v706_v44, %v704_v30  ;;  %v688_v30 = vadd.f32 %v686_v61, %v674_v32  ;;  %v809_v32 = vld [vmem:[#allocation6 + $0x300] sm:$0xff] }
 0x14b   :  { %v713_v62 = vmul.f32 %v711_v54, %v708_v18  ;;  %v714_v44 = vmul.f32 %v712_v40, %v709_v25 }
 0x14c   :  { %v718_v13 = vpop.permute.xlu0 %717  ;;  %v702_v0 = vadd.f32 %v700_v28, %v688_v30 }
 0x14d   :  { %v720_v11 = vpop.permute.xlu1 %719  ;;  %v715_v3 = vadd.f32 %v713_v62, %v701_v63 }
 0x14e   :  { %v722_v36 = vsel %vm721_vm12, %v718_v13, %v720_v11  ;;  %v723_v38 = vsel %vm721_vm12, %v720_v11, %v718_v13  ;;  %v716_v4 = vadd.f32 %v714_v44, %v702_v0 }
 0x14f   :  { %v727_v42 = vmul.f32 %v725_v52, %v722_v36  ;;  %v728_v56 = vmul.f32 %v726_v35, %v723_v38 }
 0x150   :  { %v732_v37 = vpop.permute.xlu0 %731 }
 0x151   :  { %v734_v49 = vpop.permute.xlu1 %733  ;;  %v729_v15 = vadd.f32 %v727_v42, %v715_v3  ;;  %v730_v16 = vadd.f32 %v728_v56, %v716_v4  ;;  %v842_v3 = vshrl.u32 %v139_v7, 7 }
 0x152   :  { %v736_v41 = vsel %vm735_vm13, %v732_v37, %v734_v49  ;;  %v737_v1 = vsel %vm735_vm13, %v734_v49, %v732_v37 }
 0x153   :  { %v741_v10 = vmul.f32 %v739_v46, %v736_v41  ;;  %v742_v11 = vmul.f32 %v740_v47, %v737_v1 }
 0x154   :  { %v746_v26 = vpop.permute.xlu0 %745 }
 0x155   :  { %v748_v51 = vpop.permute.xlu1 %747  ;;  %v743_v58 = vadd.f32 %v741_v10, %v729_v15  ;;  %v744_v20 = vadd.f32 %v742_v11, %v730_v16 }
 0x156   :  { %v750_v13 = vsel %vm749_vm14, %v746_v26, %v748_v51  ;;  %v751_v14 = vsel %vm749_vm14, %v748_v51, %v746_v26 }
 0x157   :  { %v755_v21 = vmul.f32 %v753_v39, %v750_v13  ;;  %v756_v24 = vmul.f32 %v754_v2, %v751_v14  ;;  %v1092_v2 = vmov 1966171168  }
 0x158   :  { %v760_v55 = vpop.permute.xlu0 %759  ;;  %v839_v13 = vunpack.c.l.s4 %v1092_v2 }
 0x159   :  { %v762_v34 = vpop.permute.xlu1 %761  ;;  %v757_v9 = vadd.f32 %v755_v21, %v743_v58  ;;  %v758_v48 = vadd.f32 %v756_v24, %v744_v20  ;;  %v971_v58 = vld [vmem:[#allocation3 + $0x8] sm:$0xff] }
 0x15a   :  { %v764_v6 = vsel %vm763_vm15, %v760_v55, %v762_v34  ;;  %v765_v50 = vsel %vm763_vm15, %v762_v34, %v760_v55  ;;  %v840_v14 = vunpack.c.0.s8 %v839_v13 }
 0x15b   :  { %v769_v22 = vmul.f32 %v767_v12, %v764_v6  ;;  %v770_v49 = vmul.f32 %v768_v5, %v765_v50  ;;  %v862_v6 = vsub.s32 0, %v842_v3  ;;  %v866_v50 = vsub.s32 1, %v842_v3 }
 0x15c   :  { %v774_v59 = vpop.permute.xlu0 %773  ;;  %v843_v10 = vsub.s32 %v840_v14, %v842_v3 }
 0x15d   :  { %v776_v17 = vpop.permute.xlu1 %775  ;;  %v771_v18 = vadd.f32 %v769_v22, %v757_v9  ;;  %v772_v25 = vadd.f32 %v770_v49, %v758_v48 }
 0x15e   :  { %v778_v37 = vsel %vm777_vm0, %v774_v59, %v776_v17  ;;  %v779_v45 = vsel %vm777_vm0, %v776_v17, %v774_v59 }
 0x15f   :  { %v783_v60 = vmul.f32 %v781_v19, %v778_v37  ;;  %v784_v31 = vmul.f32 %v782_v57, %v779_v45  ;;  %v970_v45 = vld [vmem:[#allocation3] sm:$0xff] }
 0x160   :  { %v788_v27 = vpop.permute.xlu0 %787 }
 0x161   :  { %v790_v61 = vpop.permute.xlu1 %789  ;;  %v785_v51 = vadd.f32 %v783_v60, %v771_v18  ;;  %v786_v52 = vadd.f32 %v784_v31, %v772_v25 }
 0x162   :  { %v792_v54 = vsel %vm791_vm1, %v788_v27, %v790_v61  ;;  %v793_v40 = vsel %vm791_vm1, %v790_v61, %v788_v27 }
 0x163   :  { %v797_v26 = vmul.f32 %v795_v33, %v792_v54  ;;  %v798_v29 = vmul.f32 %v796_v23, %v793_v40 }
 0x164   :  { %v802_v28 = vpop.permute.xlu0 %801 }
 0x165   :  { %v804_v35 = vpop.permute.xlu1 %803  ;;  %v799_v53 = vadd.f32 %v797_v26, %v785_v51  ;;  %v800_v30 = vadd.f32 %v798_v29, %v786_v52 }
 0x166   :  { %v806_v36 = vsel %vm805_vm2, %v802_v28, %v804_v35  ;;  %v807_v38 = vsel %vm805_vm2, %v804_v35, %v802_v28 }
 0x167   :  { %v811_v62 = vmul.f32 %v809_v32, %v806_v36  ;;  %v812_v44 = vmul.f32 %v810_v43, %v807_v38 }
 0x169   :  { %v813_v46 = vadd.f32 %v811_v62, %v799_v53  ;;  %v814_v47 = vadd.f32 %v812_v44, %v800_v30 }
 0x16b   :  { %v817_v41 = vrot.slane %v813_v46, 2  ;;  %v818_v8 = vrot.slane %v814_v47, 2 }
 0x16d   :  { %v821_v1 = vadd.f32 %v817_v41, %v813_v46  ;;  %v822_v55 = vadd.f32 %v818_v8, %v814_v47 }
 0x16f   :  { %v902_v63 = vmul.f32 -1.442695, %v821_v1  ;;  %v903_v0 = vmul.f32 -1.442695, %v822_v55 }
 0x171   :  { %962 = vpow2.f32 %v902_v63 }
 0x172   :  { %964 = vpow2.f32 %v903_v0 }
 0x17e   :  { %v963_v42 = vpop.eup %962 }
 0x17f   :  { %v965_v56 = vpop.eup %964  ;;  %v829_v34 = vadd.f32 1.0, %v963_v42 }
 0x180   :  { %v830_v39 = vadd.f32 1.0, %v965_v56 }
 0x181   :  { %966 = vrcp.f32 %v829_v34 }
 0x182   :  { %968 = vrcp.f32 %v830_v39 }
 0x18e   :  { %v967_v4 = vpop.eup %966 }
 0x18f   :  { %v969_v11 = vpop.eup %968 }
 0x190   :  { %v837_v12 = vcombine.low %v967_v4, %v969_v11 }
 0x192   :  { %v844_v5 = vrot.slane %v837_v12, %v843_v10 }
 0x194   :  { %v845_v59 = vcombine.high %v844_v5, %v844_v5  ;;  %v852_v15 = vrot.slane %v844_v5, %v843_v10 }
 0x196   :  { %v859_v16 = vrot.slane %v845_v59, %v843_v10  ;;  %v863_v21 = vrot.slane %v852_v15, %v862_v6  ;;  %v867_v24 = vrot.slane %v852_v15, %v866_v50 }
 0x198   :  { %v871_v17 = vrot.slane %v859_v16, %v862_v6  ;;  %v875_v19 = vrot.slane %v859_v16, %v866_v50  ;;  %v876_v57 = vcombine.low %v863_v21, %v867_v24 }
 0x19a   :  { %v877_v37 = vcombine.low %v871_v17, %v875_v19  ;;  %v880_v7 = vmul.f32 %v970_v45, %v876_v57 }
 0x19c   :  { %v881_v20 = vmul.f32 %v971_v58, %v877_v37  ;;  %882 = vst [vmem:[#allocation8] sm:$0xff] %v880_v7 }
 0x19e   :  { %883 = vst [vmem:[#allocation8 + $0x8] sm:$0xff] %v881_v20 }
 0x19f   :  { %1023 = shalt.err (!%p1020_p0)
}
 0x1a0   :  { %895 = dma.vmem_to_hbm [thread:$0]  %s890_s15, 256, %s1615_s2, [#allocation5], %s1039_s12, %s1039_s12, %s1040_s13  }
 0x1a1   :  { %1036 = dma.done.wait [#allocation5], 256  }
 0x1a2   :  { %1037 = vsyncadd [#allocation5], 4294967040 }
 0x1a3   :  { %899 = vsyncpa [#allocation4], 1 }
 0x1a4   :  { %900 = vsyncpa [#allocation7], 1 }
 0x1a5   :  { %901 = vsyncpa [#allocation5], 1 }

</bundles_post_ra>
